<compile_context>
chip_gen: v7x
topology: tpu7x:2x2x1
jax: 0.10.0
libtpu: 0.0.40
codegen_flags: <defaults>
</compile_context>

<pallas_src>
import functools

import jax
import jax.numpy as jnp
from jax import lax
from jax.experimental import pallas as pl
from jax.experimental.pallas import tpu as pltpu  # noqa: F401 (not needed at this size)

# ---------------- config (small, consistent with the forward) ----------------
VOCAB = 100
MAX_SEQ = 32
HIDDEN = 32
FFN = 64
LAYERS = 2
NUM_HEADS = 2
NUM_CLS = 3
NUM_NER = 5
HEAD_PAD = 128            # lane-dense padded width of the fused (cls | ner) head slab


# ---------------- shared math (usable inside and outside kernels) ----------------
def _layernorm(x, g, b, eps=1e-12):
    # E[x^2] - mu^2 form: the two reductions are independent (parallel XLU reduces).
    mu = jnp.mean(x, axis=-1, keepdims=True)
    ms = jnp.mean(x * x, axis=-1, keepdims=True)
    var = jnp.maximum(ms - mu * mu, 0.0)
    return (x - mu) * lax.rsqrt(var + eps) * g + b


def _gelu(x):
    # TODO(synk): HF BERT default is the erf-based GELU; this is the tanh approximation
    # (tanh runs on the EUP).  The pure-JAX reference uses the same formula.
    c = 0.7978845608028654  # sqrt(2/pi)
    return 0.5 * x * (1.0 + jnp.tanh(c * (x + 0.044715 * x * x * x)))


# ---------------- fused Pallas kernel: encoder (L layers) + fused task heads ----------
def fused_forward_kernel(x_ref, keep_ref,
                         wqkv_ref, bqkv_ref, wo_ref, bo_ref, ln_ref,
                         w1_ref, b1_ref, w2_ref, b2_ref,
                         wh_ref, bh_ref, o_ref,
                         *, num_heads, num_layers, seq_len):
    f32 = jnp.float32
    bf16 = jnp.bfloat16

    x = x_ref[...]                                    # (N, H) f32 residual stream, N = B*S
    N, H = x.shape
    hd = H // num_heads

    # Block-diagonal key mask built in-kernel (no O(N^2) input DMA):
    # mask[q, k] = 1 iff q and k belong to the same batch item AND key k is not padding.
    inv_s = 1.0 / float(seq_len)
    rb = jnp.floor((lax.broadcasted_iota(jnp.int32, (N, N), 0).astype(f32) + 0.5) * inv_s)
    cb = jnp.floor((lax.broadcasted_iota(jnp.int32, (N, N), 1).astype(f32) + 0.5) * inv_s)
    mask = jnp.where(rb == cb, keep_ref[...], 0.0)    # (N, N) f32, reused by every layer/head

    for l in range(num_layers):                       # static unroll (LAYERS is tiny)
        # Fused QKV projection: one (N,H)x(H,3H) MXU pass (1/sqrt(hd) folded into Wq).
        qkv = jnp.dot(x.astype(bf16), wqkv_ref[l],
                      preferred_element_type=f32) + bqkv_ref[l]          # (N, 3H) f32
        lnl = ln_ref[l]                                                  # (4, H)

        ctxs = []
        for h in range(num_heads):                    # static, tiny head count
            qh = qkv[:, h * hd:(h + 1) * hd]
            kh = qkv[:, H + h * hd:H + (h + 1) * hd]
            vh = qkv[:, 2 * H + h * hd:2 * H + (h + 1) * hd]
            # scores = q . k^T without materializing a transpose (contract last dims)
            s = lax.dot_general(qh.astype(bf16), kh.astype(bf16),
                                (((1,), (1,)), ((), ())),
                                preferred_element_type=f32)              # (N, N)
            # Scores are bounded -> no row-max subtraction; multiplicative 0/1 mask
            # after exp (masked keys contribute exactly 0 to numerator and denominator).
            p = jnp.exp(s) * mask
            p = p * pl.reciprocal(jnp.sum(p, axis=-1, keepdims=True), approx=True)
            ctxs.append(jnp.dot(p.astype(bf16), vh.astype(bf16),
                                preferred_element_type=f32))             # (N, hd)
        ctx = jnp.concatenate(ctxs, axis=-1)                             # (N, H)
        attn = jnp.dot(ctx.astype(bf16), wo_ref[l],
                       preferred_element_type=f32) + bo_ref[l]           # single Wo matmul

        h1 = _layernorm(x + attn, lnl[0:1], lnl[1:2])

        ff = jnp.dot(h1.astype(bf16), w1_ref[l],
                     preferred_element_type=f32) + b1_ref[l]             # (N, FFN)
        ff = _gelu(ff)
        ff = jnp.dot(ff.astype(bf16), w2_ref[l],
                     preferred_element_type=f32) + b2_ref[l]             # (N, H)
        x = _layernorm(h1 + ff, lnl[2:3], lnl[3:4])

    # Both task heads fused into one lane-dense (H, 128) slab -> single matmul,
    # unmasked vst stores.  Per-task column slicing happens in the JAX wrapper.
    logits = jnp.dot(x.astype(bf16), wh_ref[...],
                     preferred_element_type=f32) + bh_ref[...]
    o_ref[...] = logits.astype(o_ref.dtype)


def fused_forward(x2, keep_row, pk, seq_len):
    N = x2.shape[0]
    return pl.pallas_call(
        functools.partial(fused_forward_kernel,
                          num_heads=NUM_HEADS, num_layers=LAYERS, seq_len=seq_len),
        out_shape=jax.ShapeDtypeStruct((N, HEAD_PAD), jnp.float32),
        # gridless: whole problem is one invocation; everything fits comfortably in VMEM
    )(x2, keep_row,
      pk["wqkv"], pk["bqkv"], pk["wo"], pk["bo"], pk["ln"],
      pk["w1"], pk["b1"], pk["w2"], pk["b2"],
      pk["head_w"], pk["head_b"])


# ---------------- full model forward (mirrors MultiTaskModel.forward) ----------------
@jax.jit
def encoder_with_heads(pk, input_ids, attention_mask):
    """Single kernel launch: encoder + BOTH task heads.  Returns (B, S, HEAD_PAD)."""
    B, S = input_ids.shape

    # JAX glue: embedding gather + embedding layernorm.
    x = pk["tok_emb"][input_ids] + pk["pos_emb"][None, :S, :]
    x = _layernorm(x, pk["emb_g"], pk["emb_b"]).astype(jnp.float32)
    x2 = x.reshape(B * S, HIDDEN)

    # Only the O(B*S) keep vector crosses the pallas_call boundary; the (N,N) mask is
    # rebuilt in-kernel.
    keep_row = attention_mask.astype(jnp.float32).reshape(1, B * S)

    out = fused_forward(x2, keep_row, pk, S)
    return out.reshape(B, S, HEAD_PAD)


def slice_task(logits_slab, task):
    if task == "classification":
        return logits_slab[:, 0, :NUM_CLS]
    elif task == "ner":
        return logits_slab[:, :, NUM_CLS:NUM_CLS + NUM_NER]
    else:
        raise ValueError(f"Unknown task: {task}")


def multitask_forward(pk, input_ids, attention_mask, task):
    """Module-equivalent per-task API (single fused kernel underneath)."""
    return slice_task(encoder_with_heads(pk, input_ids, attention_mask), task)


# ---------------- pure-JAX reference (same packed params, f32 math, standard softmax) --
def reference_forward(pk, input_ids, attention_mask, task):
    B, S = input_ids.shape
    hd = HIDDEN // NUM_HEADS
    x = pk["tok_emb"][input_ids] + pk["pos_emb"][None, :S, :]
    x = _layernorm(x, pk["emb_g"], pk["emb_b"]).astype(jnp.float32)
    bias = (attention_mask.astype(jnp.float32) - 1.0)[:, None, None, :] * 1e9  # (B,1,1,S)
    for l in range(LAYERS):
        qkv = x @ pk["wqkv"][l].astype(jnp.float32) + pk["bqkv"][l]      # (B,S,3H)
        q, k, v = jnp.split(qkv, 3, axis=-1)
        q = q.reshape(B, S, NUM_HEADS, hd)
        k = k.reshape(B, S, NUM_HEADS, hd)
        v = v.reshape(B, S, NUM_HEADS, hd)
        s = jnp.einsum("bqhd,bkhd->bhqk", q, k) + bias
        p = jax.nn.softmax(s, axis=-1)
        ctx = jnp.einsum("bhqk,bkhd->bqhd", p, v).reshape(B, S, HIDDEN)
        attn = ctx @ pk["wo"][l].astype(jnp.float32) + pk["bo"][l]
        lnl = pk["ln"][l]
        h1 = _layernorm(x + attn, lnl[0:1], lnl[1:2])
        ff = _gelu(h1 @ pk["w1"][l].astype(jnp.float32) + pk["b1"][l])
        ff = ff @ pk["w2"][l].astype(jnp.float32) + pk["b2"][l]
        x = _layernorm(h1 + ff, lnl[2:3], lnl[3:4])
    logits = x @ pk["head_w"].astype(jnp.float32) + pk["head_b"]
    if task == "classification":
        return logits[:, 0, :NUM_CLS]
    elif task == "ner":
        return logits[:, :, NUM_CLS:NUM_CLS + NUM_NER]
    else:
        raise ValueError(f"Unknown task: {task}")


# ---------------- deterministic parameter init + TPU-friendly packing ----------------
def init_params(key):
    std = 0.02
    hd = HIDDEN // NUM_HEADS
    scale = 1.0 / float(hd) ** 0.5
    keys = jax.random.split(key, 5 + LAYERS)

    def dense(k, shape):
        return jax.random.normal(k, shape, jnp.float32) * std

    wqkv, bqkv, wo, bo, ln, w1, b1, w2, b2 = ([] for _ in range(9))
    for l in range(LAYERS):
        lk = jax.random.split(keys[5 + l], 6)
        wq = dense(lk[0], (HIDDEN, HIDDEN)) * scale        # fold 1/sqrt(hd) into Wq
        wk = dense(lk[1], (HIDDEN, HIDDEN))
        wv = dense(lk[2], (HIDDEN, HIDDEN))
        wqkv.append(jnp.concatenate([wq, wk, wv], axis=1))                 # (H, 3H)
        # NOTE: q-bias is zero; if a nonzero q bias is introduced it must be pre-scaled
        # by 1/sqrt(hd) as well (the scale lives only in Wq).
        bqkv.append(jnp.zeros((1, 3 * HIDDEN), jnp.float32))
        wo.append(dense(lk[3], (HIDDEN, HIDDEN)))                          # (H, H)
        bo.append(jnp.zeros((1, HIDDEN), jnp.float32))
        ln.append(jnp.stack([jnp.ones(HIDDEN), jnp.zeros(HIDDEN),
                             jnp.ones(HIDDEN), jnp.zeros(HIDDEN)]).astype(jnp.float32))
        w1.append(dense(lk[4], (HIDDEN, FFN)))
        b1.append(jnp.zeros((1, FFN), jnp.float32))
        w2.append(dense(lk[5], (FFN, HIDDEN)))
        b2.append(jnp.zeros((1, HIDDEN), jnp.float32))

    def stack_bf16(xs):
        return jnp.stack(xs).astype(jnp.bfloat16)

    def stack_f32(xs):
        return jnp.stack(xs).astype(jnp.float32)

    # Both task heads packed into ONE lane-dense (H, 128) slab:
    #   columns [0, NUM_CLS)                  -> classifier
    #   columns [NUM_CLS, NUM_CLS + NUM_NER)  -> NER head
    cls_w = dense(keys[2], (HIDDEN, NUM_CLS))
    ner_w = dense(keys[3], (HIDDEN, NUM_NER))
    hb = jax.random.split(keys[4], 2)
    cls_b = dense(hb[0], (NUM_CLS,))
    ner_b = dense(hb[1], (NUM_NER,))
    head_w = jnp.zeros((HIDDEN, HEAD_PAD), jnp.float32)
    head_w = head_w.at[:, :NUM_CLS].set(cls_w)
    head_w = head_w.at[:, NUM_CLS:NUM_CLS + NUM_NER].set(ner_w)
    head_b = jnp.zeros((1, HEAD_PAD), jnp.float32)
    head_b = head_b.at[0, :NUM_CLS].set(cls_b)
    head_b = head_b.at[0, NUM_CLS:NUM_CLS + NUM_NER].set(ner_b)

    return {
        "tok_emb": dense(keys[0], (VOCAB, HIDDEN)),
        "pos_emb": dense(keys[1], (MAX_SEQ, HIDDEN)),
        "emb_g": jnp.ones((HIDDEN,), jnp.float32),
        "emb_b": jnp.zeros((HIDDEN,), jnp.float32),
        "wqkv": stack_bf16(wqkv), "bqkv": stack_f32(bqkv),
        "wo": stack_bf16(wo), "bo": stack_f32(bo),
        "ln": stack_f32(ln),
        "w1": stack_bf16(w1), "b1": stack_f32(b1),
        "w2": stack_bf16(w2), "b2": stack_f32(b2),
        "head_w": head_w.astype(jnp.bfloat16), "head_b": head_b,
    }


if __name__ == "__main__":
    root = jax.random.PRNGKey(0)
    k_params, k_ids = jax.random.split(root, 2)
    pk = init_params(k_params)

    B, S = 2, 8
    input_ids = jax.random.randint(k_ids, (B, S), 0, VOCAB, dtype=jnp.int32)
    attention_mask = jnp.ones((B, S), dtype=jnp.int32).at[1, 6:].set(0)  # pad tail of sample 1

    # ONE kernel launch serves BOTH tasks (encoder runs once).
    slab = encoder_with_heads(pk, input_ids, attention_mask)
    jax.block_until_ready(slab)
    cls_logits = slice_task(slab, "classification")
    ner_logits = slice_task(slab, "ner")
    jax.block_until_ready((cls_logits, ner_logits))

    # pure-JAX reference check (bf16 matmuls, approx reciprocal, no-max softmax vs the
    # standard additive-bias softmax -> loose tolerance guards the approximations)
    cls_ref = reference_forward(pk, input_ids, attention_mask, "classification")
    ner_ref = reference_forward(pk, input_ids, attention_mask, "ner")

    assert cls_logits.shape == (B, NUM_CLS), cls_logits.shape
    assert ner_logits.shape == (B, S, NUM_NER), ner_logits.shape
    assert jnp.all(jnp.isfinite(cls_logits)) and jnp.all(jnp.isfinite(ner_logits))
    assert jnp.allclose(cls_logits, cls_ref, atol=3e-2, rtol=3e-2)
    assert jnp.allclose(ner_logits, ner_ref, atol=3e-2, rtol=3e-2)
    print("KERNEL_OK")
</pallas_src>

<mosaic_0001>
module attributes {stable_mosaic.version = 11 : i64} {
  func.func @fused_forward_kernel(%arg0: memref<16x32xf32, #tpu.memory_space<vmem>>, %arg1: memref<1x16xf32, #tpu.memory_space<vmem>>, %arg2: memref<2x32x96xbf16, #tpu.memory_space<vmem>>, %arg3: memref<2x1x96xf32, #tpu.memory_space<vmem>>, %arg4: memref<2x32x32xbf16, #tpu.memory_space<vmem>>, %arg5: memref<2x1x32xf32, #tpu.memory_space<vmem>>, %arg6: memref<2x4x32xf32, #tpu.memory_space<vmem>>, %arg7: memref<2x32x64xbf16, #tpu.memory_space<vmem>>, %arg8: memref<2x1x64xf32, #tpu.memory_space<vmem>>, %arg9: memref<2x64x32xbf16, #tpu.memory_space<vmem>>, %arg10: memref<2x1x32xf32, #tpu.memory_space<vmem>>, %arg11: memref<32x128xbf16, #tpu.memory_space<vmem>>, %arg12: memref<1x128xf32, #tpu.memory_space<vmem>>, %arg13: memref<16x128xf32, #tpu.memory_space<vmem>>) attributes {dimension_semantics = [], scalar_prefetch = 0 : i64, scratch_operands = 0 : i64, tpu.core_type = #tpu.core_type<tc>} {
    %c0 = arith.constant 0 : index
    %c0_0 = arith.constant 0 : index
    %0 = vector.load %arg0[%c0, %c0_0] : memref<16x32xf32, #tpu.memory_space<vmem>>, vector<16x32xf32>
    %1 = tpu.iota {dimensions = array<i32: 0>} : vector<16x16xi32>
    %2 = arith.sitofp %1 : vector<16x16xi32> to vector<16x16xf32>
    %cst = arith.constant 5.000000e-01 : f32
    %3 = vector.broadcast %cst : f32 to vector<16x16xf32>
    %4 = arith.addf %2, %3 : vector<16x16xf32>
    %cst_1 = arith.constant 1.250000e-01 : f32
    %5 = vector.broadcast %cst_1 : f32 to vector<16x16xf32>
    %6 = arith.mulf %4, %5 : vector<16x16xf32>
    %7 = math.floor %6 : vector<16x16xf32>
    %8 = tpu.iota {dimensions = array<i32: 1>} : vector<16x16xi32>
    %9 = arith.sitofp %8 : vector<16x16xi32> to vector<16x16xf32>
    %cst_2 = arith.constant 5.000000e-01 : f32
    %10 = vector.broadcast %cst_2 : f32 to vector<16x16xf32>
    %11 = arith.addf %9, %10 : vector<16x16xf32>
    %cst_3 = arith.constant 1.250000e-01 : f32
    %12 = vector.broadcast %cst_3 : f32 to vector<16x16xf32>
    %13 = arith.mulf %11, %12 : vector<16x16xf32>
    %14 = math.floor %13 : vector<16x16xf32>
    %15 = arith.cmpf oeq, %7, %14 : vector<16x16xf32>
    %c0_4 = arith.constant 0 : index
    %c0_5 = arith.constant 0 : index
    %16 = vector.load %arg1[%c0_4, %c0_5] : memref<1x16xf32, #tpu.memory_space<vmem>>, vector<1x16xf32>
    %cst_6 = arith.constant 0.000000e+00 : f32
    %17 = vector.shape_cast %16 : vector<1x16xf32> to vector<1x16xf32>
    %18 = vector.broadcast %17 : vector<1x16xf32> to vector<16x16xf32>
    %19 = vector.broadcast %cst_6 : f32 to vector<16x16xf32>
    %20 = arith.select %15, %18, %19 : vector<16x16xi1>, vector<16x16xf32>
    %21 = arith.truncf %0 : vector<16x32xf32> to vector<16x32xbf16>
    %c0_7 = arith.constant 0 : index
    %c0_8 = arith.constant 0 : index
    %c0_9 = arith.constant 0 : index
    %22 = vector.load %arg2[%c0_7, %c0_8, %c0_9] : memref<2x32x96xbf16, #tpu.memory_space<vmem>>, vector<1x32x96xbf16>
    %23 = vector.shape_cast %22 : vector<1x32x96xbf16> to vector<32x96xbf16>
    %cst_10 = arith.constant dense<0.000000e+00> : vector<16x96xf32>
    %24 = tpu.matmul %21, %23, %cst_10 {dimension_numbers = #tpu.dot_dimension_numbers<[1], [0], [0], [1], [0, 0, 1, 1], [], []>} : vector<16x32xbf16>, vector<32x96xbf16>, vector<16x96xf32> -> vector<16x96xf32>
    %c0_11 = arith.constant 0 : index
    %c0_12 = arith.constant 0 : index
    %c0_13 = arith.constant 0 : index
    %25 = vector.load %arg3[%c0_11, %c0_12, %c0_13] : memref<2x1x96xf32, #tpu.memory_space<vmem>>, vector<1x1x96xf32>
    %26 = vector.shape_cast %25 : vector<1x1x96xf32> to vector<1x96xf32>
    %27 = vector.broadcast %26 : vector<1x96xf32> to vector<16x96xf32>
    %28 = arith.addf %24, %27 : vector<16x96xf32>
    %c0_14 = arith.constant 0 : index
    %c0_15 = arith.constant 0 : index
    %c0_16 = arith.constant 0 : index
    %29 = vector.load %arg6[%c0_14, %c0_15, %c0_16] : memref<2x4x32xf32, #tpu.memory_space<vmem>>, vector<1x4x32xf32>
    %30 = vector.shape_cast %29 : vector<1x4x32xf32> to vector<4x32xf32>
    %31 = vector.extract_strided_slice %28 {offsets = [0, 0], sizes = [16, 16], strides = [1, 1]} : vector<16x96xf32> to vector<16x16xf32>
    %32 = vector.extract_strided_slice %28 {offsets = [0, 32], sizes = [16, 16], strides = [1, 1]} : vector<16x96xf32> to vector<16x16xf32>
    %33 = vector.extract_strided_slice %28 {offsets = [0, 64], sizes = [16, 16], strides = [1, 1]} : vector<16x96xf32> to vector<16x16xf32>
    %34 = arith.truncf %31 : vector<16x16xf32> to vector<16x16xbf16>
    %35 = arith.truncf %32 : vector<16x16xf32> to vector<16x16xbf16>
    %cst_17 = arith.constant dense<0.000000e+00> : vector<16x16xf32>
    %36 = tpu.matmul %34, %35, %cst_17 {dimension_numbers = #tpu.dot_dimension_numbers<[1], [1], [0], [0], [0, 0, 1, 0], [], []>} : vector<16x16xbf16>, vector<16x16xbf16>, vector<16x16xf32> -> vector<16x16xf32>
    %37 = math.exp %36 : vector<16x16xf32>
    %38 = arith.mulf %37, %20 : vector<16x16xf32>
    %cst_18 = arith.constant dense<0.000000e+00> : vector<16xf32>
    %39 = vector.multi_reduction <add>, %38, %cst_18 [1] : vector<16x16xf32> to vector<16xf32>
    %40 = vector.shape_cast %39 : vector<16xf32> to vector<16x1xf32>
    %41 = tpu.reciprocal %40 {approx = true} : vector<16x1xf32> -> vector<16x1xf32>
    %42 = vector.broadcast %41 : vector<16x1xf32> to vector<16x16xf32>
    %43 = arith.mulf %38, %42 : vector<16x16xf32>
    %44 = arith.truncf %43 : vector<16x16xf32> to vector<16x16xbf16>
    %45 = arith.truncf %33 : vector<16x16xf32> to vector<16x16xbf16>
    %cst_19 = arith.constant dense<0.000000e+00> : vector<16x16xf32>
    %46 = tpu.matmul %44, %45, %cst_19 {dimension_numbers = #tpu.dot_dimension_numbers<[1], [0], [0], [1], [0, 0, 1, 1], [], []>} : vector<16x16xbf16>, vector<16x16xbf16>, vector<16x16xf32> -> vector<16x16xf32>
    %47 = vector.extract_strided_slice %28 {offsets = [0, 16], sizes = [16, 16], strides = [1, 1]} : vector<16x96xf32> to vector<16x16xf32>
    %48 = vector.extract_strided_slice %28 {offsets = [0, 48], sizes = [16, 16], strides = [1, 1]} : vector<16x96xf32> to vector<16x16xf32>
    %49 = vector.extract_strided_slice %28 {offsets = [0, 80], sizes = [16, 16], strides = [1, 1]} : vector<16x96xf32> to vector<16x16xf32>
    %50 = arith.truncf %47 : vector<16x16xf32> to vector<16x16xbf16>
    %51 = arith.truncf %48 : vector<16x16xf32> to vector<16x16xbf16>
    %cst_20 = arith.constant dense<0.000000e+00> : vector<16x16xf32>
    %52 = tpu.matmul %50, %51, %cst_20 {dimension_numbers = #tpu.dot_dimension_numbers<[1], [1], [0], [0], [0, 0, 1, 0], [], []>} : vector<16x16xbf16>, vector<16x16xbf16>, vector<16x16xf32> -> vector<16x16xf32>
    %53 = math.exp %52 : vector<16x16xf32>
    %54 = arith.mulf %53, %20 : vector<16x16xf32>
    %cst_21 = arith.constant dense<0.000000e+00> : vector<16xf32>
    %55 = vector.multi_reduction <add>, %54, %cst_21 [1] : vector<16x16xf32> to vector<16xf32>
    %56 = vector.shape_cast %55 : vector<16xf32> to vector<16x1xf32>
    %57 = tpu.reciprocal %56 {approx = true} : vector<16x1xf32> -> vector<16x1xf32>
    %58 = vector.broadcast %57 : vector<16x1xf32> to vector<16x16xf32>
    %59 = arith.mulf %54, %58 : vector<16x16xf32>
    %60 = arith.truncf %59 : vector<16x16xf32> to vector<16x16xbf16>
    %61 = arith.truncf %49 : vector<16x16xf32> to vector<16x16xbf16>
    %cst_22 = arith.constant dense<0.000000e+00> : vector<16x16xf32>
    %62 = tpu.matmul %60, %61, %cst_22 {dimension_numbers = #tpu.dot_dimension_numbers<[1], [0], [0], [1], [0, 0, 1, 1], [], []>} : vector<16x16xbf16>, vector<16x16xbf16>, vector<16x16xf32> -> vector<16x16xf32>
    %63 = tpu.concatenate %46, %62 in 1 : vector<16x16xf32>, vector<16x16xf32> -> vector<16x32xf32>
    %64 = arith.truncf %63 : vector<16x32xf32> to vector<16x32xbf16>
    %c0_23 = arith.constant 0 : index
    %c0_24 = arith.constant 0 : index
    %c0_25 = arith.constant 0 : index
    %65 = vector.load %arg4[%c0_23, %c0_24, %c0_25] : memref<2x32x32xbf16, #tpu.memory_space<vmem>>, vector<1x32x32xbf16>
    %66 = vector.shape_cast %65 : vector<1x32x32xbf16> to vector<32x32xbf16>
    %cst_26 = arith.constant dense<0.000000e+00> : vector<16x32xf32>
    %67 = tpu.matmul %64, %66, %cst_26 {dimension_numbers = #tpu.dot_dimension_numbers<[1], [0], [0], [1], [0, 0, 1, 1], [], []>} : vector<16x32xbf16>, vector<32x32xbf16>, vector<16x32xf32> -> vector<16x32xf32>
    %c0_27 = arith.constant 0 : index
    %c0_28 = arith.constant 0 : index
    %c0_29 = arith.constant 0 : index
    %68 = vector.load %arg5[%c0_27, %c0_28, %c0_29] : memref<2x1x32xf32, #tpu.memory_space<vmem>>, vector<1x1x32xf32>
    %69 = vector.shape_cast %68 : vector<1x1x32xf32> to vector<1x32xf32>
    %70 = vector.broadcast %69 : vector<1x32xf32> to vector<16x32xf32>
    %71 = arith.addf %67, %70 : vector<16x32xf32>
    %72 = arith.addf %0, %71 : vector<16x32xf32>
    %73 = vector.extract_strided_slice %30 {offsets = [0, 0], sizes = [1, 32], strides = [1, 1]} : vector<4x32xf32> to vector<1x32xf32>
    %74 = vector.extract_strided_slice %30 {offsets = [1, 0], sizes = [1, 32], strides = [1, 1]} : vector<4x32xf32> to vector<1x32xf32>
    %cst_30 = arith.constant dense<0.000000e+00> : vector<16xf32>
    %75 = vector.multi_reduction <add>, %72, %cst_30 [1] : vector<16x32xf32> to vector<16xf32>
    %76 = vector.shape_cast %75 : vector<16xf32> to vector<16x1xf32>
    %cst_31 = arith.constant 3.200000e+01 : f32
    %77 = vector.broadcast %cst_31 : f32 to vector<16x1xf32>
    %78 = arith.divf %76, %77 : vector<16x1xf32>
    %79 = arith.mulf %72, %72 : vector<16x32xf32>
    %cst_32 = arith.constant dense<0.000000e+00> : vector<16xf32>
    %80 = vector.multi_reduction <add>, %79, %cst_32 [1] : vector<16x32xf32> to vector<16xf32>
    %81 = vector.shape_cast %80 : vector<16xf32> to vector<16x1xf32>
    %cst_33 = arith.constant 3.200000e+01 : f32
    %82 = vector.broadcast %cst_33 : f32 to vector<16x1xf32>
    %83 = arith.divf %81, %82 : vector<16x1xf32>
    %84 = arith.mulf %78, %78 : vector<16x1xf32>
    %85 = arith.subf %83, %84 : vector<16x1xf32>
    %cst_34 = arith.constant 0.000000e+00 : f32
    %86 = vector.broadcast %cst_34 : f32 to vector<16x1xf32>
    %87 = arith.maximumf %85, %86 : vector<16x1xf32>
    %88 = vector.broadcast %78 : vector<16x1xf32> to vector<16x32xf32>
    %89 = arith.subf %72, %88 : vector<16x32xf32>
    %cst_35 = arith.constant 9.99999996E-13 : f32
    %90 = vector.broadcast %cst_35 : f32 to vector<16x1xf32>
    %91 = arith.addf %87, %90 : vector<16x1xf32>
    %92 = math.rsqrt %91 : vector<16x1xf32>
    %93 = vector.broadcast %92 : vector<16x1xf32> to vector<16x32xf32>
    %94 = arith.mulf %89, %93 : vector<16x32xf32>
    %95 = vector.broadcast %73 : vector<1x32xf32> to vector<16x32xf32>
    %96 = arith.mulf %94, %95 : vector<16x32xf32>
    %97 = vector.broadcast %74 : vector<1x32xf32> to vector<16x32xf32>
    %98 = arith.addf %96, %97 : vector<16x32xf32>
    %99 = arith.truncf %98 : vector<16x32xf32> to vector<16x32xbf16>
    %c0_36 = arith.constant 0 : index
    %c0_37 = arith.constant 0 : index
    %c0_38 = arith.constant 0 : index
    %100 = vector.load %arg7[%c0_36, %c0_37, %c0_38] : memref<2x32x64xbf16, #tpu.memory_space<vmem>>, vector<1x32x64xbf16>
    %101 = vector.shape_cast %100 : vector<1x32x64xbf16> to vector<32x64xbf16>
    %cst_39 = arith.constant dense<0.000000e+00> : vector<16x64xf32>
    %102 = tpu.matmul %99, %101, %cst_39 {dimension_numbers = #tpu.dot_dimension_numbers<[1], [0], [0], [1], [0, 0, 1, 1], [], []>} : vector<16x32xbf16>, vector<32x64xbf16>, vector<16x64xf32> -> vector<16x64xf32>
    %c0_40 = arith.constant 0 : index
    %c0_41 = arith.constant 0 : index
    %c0_42 = arith.constant 0 : index
    %103 = vector.load %arg8[%c0_40, %c0_41, %c0_42] : memref<2x1x64xf32, #tpu.memory_space<vmem>>, vector<1x1x64xf32>
    %104 = vector.shape_cast %103 : vector<1x1x64xf32> to vector<1x64xf32>
    %105 = vector.broadcast %104 : vector<1x64xf32> to vector<16x64xf32>
    %106 = arith.addf %102, %105 : vector<16x64xf32>
    %cst_43 = arith.constant 5.000000e-01 : f32
    %107 = vector.broadcast %cst_43 : f32 to vector<16x64xf32>
    %108 = arith.mulf %107, %106 : vector<16x64xf32>
    %cst_44 = arith.constant 4.471500e-02 : f32
    %109 = vector.broadcast %cst_44 : f32 to vector<16x64xf32>
    %110 = arith.mulf %109, %106 : vector<16x64xf32>
    %111 = arith.mulf %110, %106 : vector<16x64xf32>
    %112 = arith.mulf %111, %106 : vector<16x64xf32>
    %113 = arith.addf %106, %112 : vector<16x64xf32>
    %cst_45 = arith.constant 0.797884583 : f32
    %114 = vector.broadcast %cst_45 : f32 to vector<16x64xf32>
    %115 = arith.mulf %114, %113 : vector<16x64xf32>
    %116 = math.tanh %115 : vector<16x64xf32>
    %cst_46 = arith.constant 1.000000e+00 : f32
    %117 = vector.broadcast %cst_46 : f32 to vector<16x64xf32>
    %118 = arith.addf %117, %116 : vector<16x64xf32>
    %119 = arith.mulf %108, %118 : vector<16x64xf32>
    %120 = arith.truncf %119 : vector<16x64xf32> to vector<16x64xbf16>
    %c0_47 = arith.constant 0 : index
    %c0_48 = arith.constant 0 : index
    %c0_49 = arith.constant 0 : index
    %121 = vector.load %arg9[%c0_47, %c0_48, %c0_49] : memref<2x64x32xbf16, #tpu.memory_space<vmem>>, vector<1x64x32xbf16>
    %122 = vector.shape_cast %121 : vector<1x64x32xbf16> to vector<64x32xbf16>
    %cst_50 = arith.constant dense<0.000000e+00> : vector<16x32xf32>
    %123 = tpu.matmul %120, %122, %cst_50 {dimension_numbers = #tpu.dot_dimension_numbers<[1], [0], [0], [1], [0, 0, 1, 1], [], []>} : vector<16x64xbf16>, vector<64x32xbf16>, vector<16x32xf32> -> vector<16x32xf32>
    %c0_51 = arith.constant 0 : index
    %c0_52 = arith.constant 0 : index
    %c0_53 = arith.constant 0 : index
    %124 = vector.load %arg10[%c0_51, %c0_52, %c0_53] : memref<2x1x32xf32, #tpu.memory_space<vmem>>, vector<1x1x32xf32>
    %125 = vector.shape_cast %124 : vector<1x1x32xf32> to vector<1x32xf32>
    %126 = vector.broadcast %125 : vector<1x32xf32> to vector<16x32xf32>
    %127 = arith.addf %123, %126 : vector<16x32xf32>
    %128 = arith.addf %98, %127 : vector<16x32xf32>
    %129 = vector.extract_strided_slice %30 {offsets = [2, 0], sizes = [1, 32], strides = [1, 1]} : vector<4x32xf32> to vector<1x32xf32>
    %130 = vector.extract_strided_slice %30 {offsets = [3, 0], sizes = [1, 32], strides = [1, 1]} : vector<4x32xf32> to vector<1x32xf32>
    %cst_54 = arith.constant dense<0.000000e+00> : vector<16xf32>
    %131 = vector.multi_reduction <add>, %128, %cst_54 [1] : vector<16x32xf32> to vector<16xf32>
    %132 = vector.shape_cast %131 : vector<16xf32> to vector<16x1xf32>
    %cst_55 = arith.constant 3.200000e+01 : f32
    %133 = vector.broadcast %cst_55 : f32 to vector<16x1xf32>
    %134 = arith.divf %132, %133 : vector<16x1xf32>
    %135 = arith.mulf %128, %128 : vector<16x32xf32>
    %cst_56 = arith.constant dense<0.000000e+00> : vector<16xf32>
    %136 = vector.multi_reduction <add>, %135, %cst_56 [1] : vector<16x32xf32> to vector<16xf32>
    %137 = vector.shape_cast %136 : vector<16xf32> to vector<16x1xf32>
    %cst_57 = arith.constant 3.200000e+01 : f32
    %138 = vector.broadcast %cst_57 : f32 to vector<16x1xf32>
    %139 = arith.divf %137, %138 : vector<16x1xf32>
    %140 = arith.mulf %134, %134 : vector<16x1xf32>
    %141 = arith.subf %139, %140 : vector<16x1xf32>
    %cst_58 = arith.constant 0.000000e+00 : f32
    %142 = vector.broadcast %cst_58 : f32 to vector<16x1xf32>
    %143 = arith.maximumf %141, %142 : vector<16x1xf32>
    %144 = vector.broadcast %134 : vector<16x1xf32> to vector<16x32xf32>
    %145 = arith.subf %128, %144 : vector<16x32xf32>
    %cst_59 = arith.constant 9.99999996E-13 : f32
    %146 = vector.broadcast %cst_59 : f32 to vector<16x1xf32>
    %147 = arith.addf %143, %146 : vector<16x1xf32>
    %148 = math.rsqrt %147 : vector<16x1xf32>
    %149 = vector.broadcast %148 : vector<16x1xf32> to vector<16x32xf32>
    %150 = arith.mulf %145, %149 : vector<16x32xf32>
    %151 = vector.broadcast %129 : vector<1x32xf32> to vector<16x32xf32>
    %152 = arith.mulf %150, %151 : vector<16x32xf32>
    %153 = vector.broadcast %130 : vector<1x32xf32> to vector<16x32xf32>
    %154 = arith.addf %152, %153 : vector<16x32xf32>
    %155 = arith.truncf %154 : vector<16x32xf32> to vector<16x32xbf16>
    %c1 = arith.constant 1 : index
    %c0_60 = arith.constant 0 : index
    %c0_61 = arith.constant 0 : index
    %156 = vector.load %arg2[%c1, %c0_60, %c0_61] : memref<2x32x96xbf16, #tpu.memory_space<vmem>>, vector<1x32x96xbf16>
    %157 = vector.shape_cast %156 : vector<1x32x96xbf16> to vector<32x96xbf16>
    %cst_62 = arith.constant dense<0.000000e+00> : vector<16x96xf32>
    %158 = tpu.matmul %155, %157, %cst_62 {dimension_numbers = #tpu.dot_dimension_numbers<[1], [0], [0], [1], [0, 0, 1, 1], [], []>} : vector<16x32xbf16>, vector<32x96xbf16>, vector<16x96xf32> -> vector<16x96xf32>
    %c1_63 = arith.constant 1 : index
    %c0_64 = arith.constant 0 : index
    %c0_65 = arith.constant 0 : index
    %159 = vector.load %arg3[%c1_63, %c0_64, %c0_65] : memref<2x1x96xf32, #tpu.memory_space<vmem>>, vector<1x1x96xf32>
    %160 = vector.shape_cast %159 : vector<1x1x96xf32> to vector<1x96xf32>
    %161 = vector.broadcast %160 : vector<1x96xf32> to vector<16x96xf32>
    %162 = arith.addf %158, %161 : vector<16x96xf32>
    %c1_66 = arith.constant 1 : index
    %c0_67 = arith.constant 0 : index
    %c0_68 = arith.constant 0 : index
    %163 = vector.load %arg6[%c1_66, %c0_67, %c0_68] : memref<2x4x32xf32, #tpu.memory_space<vmem>>, vector<1x4x32xf32>
    %164 = vector.shape_cast %163 : vector<1x4x32xf32> to vector<4x32xf32>
    %165 = vector.extract_strided_slice %162 {offsets = [0, 0], sizes = [16, 16], strides = [1, 1]} : vector<16x96xf32> to vector<16x16xf32>
    %166 = vector.extract_strided_slice %162 {offsets = [0, 32], sizes = [16, 16], strides = [1, 1]} : vector<16x96xf32> to vector<16x16xf32>
    %167 = vector.extract_strided_slice %162 {offsets = [0, 64], sizes = [16, 16], strides = [1, 1]} : vector<16x96xf32> to vector<16x16xf32>
    %168 = arith.truncf %165 : vector<16x16xf32> to vector<16x16xbf16>
    %169 = arith.truncf %166 : vector<16x16xf32> to vector<16x16xbf16>
    %cst_69 = arith.constant dense<0.000000e+00> : vector<16x16xf32>
    %170 = tpu.matmul %168, %169, %cst_69 {dimension_numbers = #tpu.dot_dimension_numbers<[1], [1], [0], [0], [0, 0, 1, 0], [], []>} : vector<16x16xbf16>, vector<16x16xbf16>, vector<16x16xf32> -> vector<16x16xf32>
    %171 = math.exp %170 : vector<16x16xf32>
    %172 = arith.mulf %171, %20 : vector<16x16xf32>
    %cst_70 = arith.constant dense<0.000000e+00> : vector<16xf32>
    %173 = vector.multi_reduction <add>, %172, %cst_70 [1] : vector<16x16xf32> to vector<16xf32>
    %174 = vector.shape_cast %173 : vector<16xf32> to vector<16x1xf32>
    %175 = tpu.reciprocal %174 {approx = true} : vector<16x1xf32> -> vector<16x1xf32>
    %176 = vector.broadcast %175 : vector<16x1xf32> to vector<16x16xf32>
    %177 = arith.mulf %172, %176 : vector<16x16xf32>
    %178 = arith.truncf %177 : vector<16x16xf32> to vector<16x16xbf16>
    %179 = arith.truncf %167 : vector<16x16xf32> to vector<16x16xbf16>
    %cst_71 = arith.constant dense<0.000000e+00> : vector<16x16xf32>
    %180 = tpu.matmul %178, %179, %cst_71 {dimension_numbers = #tpu.dot_dimension_numbers<[1], [0], [0], [1], [0, 0, 1, 1], [], []>} : vector<16x16xbf16>, vector<16x16xbf16>, vector<16x16xf32> -> vector<16x16xf32>
    %181 = vector.extract_strided_slice %162 {offsets = [0, 16], sizes = [16, 16], strides = [1, 1]} : vector<16x96xf32> to vector<16x16xf32>
    %182 = vector.extract_strided_slice %162 {offsets = [0, 48], sizes = [16, 16], strides = [1, 1]} : vector<16x96xf32> to vector<16x16xf32>
    %183 = vector.extract_strided_slice %162 {offsets = [0, 80], sizes = [16, 16], strides = [1, 1]} : vector<16x96xf32> to vector<16x16xf32>
    %184 = arith.truncf %181 : vector<16x16xf32> to vector<16x16xbf16>
    %185 = arith.truncf %182 : vector<16x16xf32> to vector<16x16xbf16>
    %cst_72 = arith.constant dense<0.000000e+00> : vector<16x16xf32>
    %186 = tpu.matmul %184, %185, %cst_72 {dimension_numbers = #tpu.dot_dimension_numbers<[1], [1], [0], [0], [0, 0, 1, 0], [], []>} : vector<16x16xbf16>, vector<16x16xbf16>, vector<16x16xf32> -> vector<16x16xf32>
    %187 = math.exp %186 : vector<16x16xf32>
    %188 = arith.mulf %187, %20 : vector<16x16xf32>
    %cst_73 = arith.constant dense<0.000000e+00> : vector<16xf32>
    %189 = vector.multi_reduction <add>, %188, %cst_73 [1] : vector<16x16xf32> to vector<16xf32>
    %190 = vector.shape_cast %189 : vector<16xf32> to vector<16x1xf32>
    %191 = tpu.reciprocal %190 {approx = true} : vector<16x1xf32> -> vector<16x1xf32>
    %192 = vector.broadcast %191 : vector<16x1xf32> to vector<16x16xf32>
    %193 = arith.mulf %188, %192 : vector<16x16xf32>
    %194 = arith.truncf %193 : vector<16x16xf32> to vector<16x16xbf16>
    %195 = arith.truncf %183 : vector<16x16xf32> to vector<16x16xbf16>
    %cst_74 = arith.constant dense<0.000000e+00> : vector<16x16xf32>
    %196 = tpu.matmul %194, %195, %cst_74 {dimension_numbers = #tpu.dot_dimension_numbers<[1], [0], [0], [1], [0, 0, 1, 1], [], []>} : vector<16x16xbf16>, vector<16x16xbf16>, vector<16x16xf32> -> vector<16x16xf32>
    %197 = tpu.concatenate %180, %196 in 1 : vector<16x16xf32>, vector<16x16xf32> -> vector<16x32xf32>
    %198 = arith.truncf %197 : vector<16x32xf32> to vector<16x32xbf16>
    %c1_75 = arith.constant 1 : index
    %c0_76 = arith.constant 0 : index
    %c0_77 = arith.constant 0 : index
    %199 = vector.load %arg4[%c1_75, %c0_76, %c0_77] : memref<2x32x32xbf16, #tpu.memory_space<vmem>>, vector<1x32x32xbf16>
    %200 = vector.shape_cast %199 : vector<1x32x32xbf16> to vector<32x32xbf16>
    %cst_78 = arith.constant dense<0.000000e+00> : vector<16x32xf32>
    %201 = tpu.matmul %198, %200, %cst_78 {dimension_numbers = #tpu.dot_dimension_numbers<[1], [0], [0], [1], [0, 0, 1, 1], [], []>} : vector<16x32xbf16>, vector<32x32xbf16>, vector<16x32xf32> -> vector<16x32xf32>
    %c1_79 = arith.constant 1 : index
    %c0_80 = arith.constant 0 : index
    %c0_81 = arith.constant 0 : index
    %202 = vector.load %arg5[%c1_79, %c0_80, %c0_81] : memref<2x1x32xf32, #tpu.memory_space<vmem>>, vector<1x1x32xf32>
    %203 = vector.shape_cast %202 : vector<1x1x32xf32> to vector<1x32xf32>
    %204 = vector.broadcast %203 : vector<1x32xf32> to vector<16x32xf32>
    %205 = arith.addf %201, %204 : vector<16x32xf32>
    %206 = arith.addf %154, %205 : vector<16x32xf32>
    %207 = vector.extract_strided_slice %164 {offsets = [0, 0], sizes = [1, 32], strides = [1, 1]} : vector<4x32xf32> to vector<1x32xf32>
    %208 = vector.extract_strided_slice %164 {offsets = [1, 0], sizes = [1, 32], strides = [1, 1]} : vector<4x32xf32> to vector<1x32xf32>
    %cst_82 = arith.constant dense<0.000000e+00> : vector<16xf32>
    %209 = vector.multi_reduction <add>, %206, %cst_82 [1] : vector<16x32xf32> to vector<16xf32>
    %210 = vector.shape_cast %209 : vector<16xf32> to vector<16x1xf32>
    %cst_83 = arith.constant 3.200000e+01 : f32
    %211 = vector.broadcast %cst_83 : f32 to vector<16x1xf32>
    %212 = arith.divf %210, %211 : vector<16x1xf32>
    %213 = arith.mulf %206, %206 : vector<16x32xf32>
    %cst_84 = arith.constant dense<0.000000e+00> : vector<16xf32>
    %214 = vector.multi_reduction <add>, %213, %cst_84 [1] : vector<16x32xf32> to vector<16xf32>
    %215 = vector.shape_cast %214 : vector<16xf32> to vector<16x1xf32>
    %cst_85 = arith.constant 3.200000e+01 : f32
    %216 = vector.broadcast %cst_85 : f32 to vector<16x1xf32>
    %217 = arith.divf %215, %216 : vector<16x1xf32>
    %218 = arith.mulf %212, %212 : vector<16x1xf32>
    %219 = arith.subf %217, %218 : vector<16x1xf32>
    %cst_86 = arith.constant 0.000000e+00 : f32
    %220 = vector.broadcast %cst_86 : f32 to vector<16x1xf32>
    %221 = arith.maximumf %219, %220 : vector<16x1xf32>
    %222 = vector.broadcast %212 : vector<16x1xf32> to vector<16x32xf32>
    %223 = arith.subf %206, %222 : vector<16x32xf32>
    %cst_87 = arith.constant 9.99999996E-13 : f32
    %224 = vector.broadcast %cst_87 : f32 to vector<16x1xf32>
    %225 = arith.addf %221, %224 : vector<16x1xf32>
    %226 = math.rsqrt %225 : vector<16x1xf32>
    %227 = vector.broadcast %226 : vector<16x1xf32> to vector<16x32xf32>
    %228 = arith.mulf %223, %227 : vector<16x32xf32>
    %229 = vector.broadcast %207 : vector<1x32xf32> to vector<16x32xf32>
    %230 = arith.mulf %228, %229 : vector<16x32xf32>
    %231 = vector.broadcast %208 : vector<1x32xf32> to vector<16x32xf32>
    %232 = arith.addf %230, %231 : vector<16x32xf32>
    %233 = arith.truncf %232 : vector<16x32xf32> to vector<16x32xbf16>
    %c1_88 = arith.constant 1 : index
    %c0_89 = arith.constant 0 : index
    %c0_90 = arith.constant 0 : index
    %234 = vector.load %arg7[%c1_88, %c0_89, %c0_90] : memref<2x32x64xbf16, #tpu.memory_space<vmem>>, vector<1x32x64xbf16>
    %235 = vector.shape_cast %234 : vector<1x32x64xbf16> to vector<32x64xbf16>
    %cst_91 = arith.constant dense<0.000000e+00> : vector<16x64xf32>
    %236 = tpu.matmul %233, %235, %cst_91 {dimension_numbers = #tpu.dot_dimension_numbers<[1], [0], [0], [1], [0, 0, 1, 1], [], []>} : vector<16x32xbf16>, vector<32x64xbf16>, vector<16x64xf32> -> vector<16x64xf32>
    %c1_92 = arith.constant 1 : index
    %c0_93 = arith.constant 0 : index
    %c0_94 = arith.constant 0 : index
    %237 = vector.load %arg8[%c1_92, %c0_93, %c0_94] : memref<2x1x64xf32, #tpu.memory_space<vmem>>, vector<1x1x64xf32>
    %238 = vector.shape_cast %237 : vector<1x1x64xf32> to vector<1x64xf32>
    %239 = vector.broadcast %238 : vector<1x64xf32> to vector<16x64xf32>
    %240 = arith.addf %236, %239 : vector<16x64xf32>
    %cst_95 = arith.constant 5.000000e-01 : f32
    %241 = vector.broadcast %cst_95 : f32 to vector<16x64xf32>
    %242 = arith.mulf %241, %240 : vector<16x64xf32>
    %cst_96 = arith.constant 4.471500e-02 : f32
    %243 = vector.broadcast %cst_96 : f32 to vector<16x64xf32>
    %244 = arith.mulf %243, %240 : vector<16x64xf32>
    %245 = arith.mulf %244, %240 : vector<16x64xf32>
    %246 = arith.mulf %245, %240 : vector<16x64xf32>
    %247 = arith.addf %240, %246 : vector<16x64xf32>
    %cst_97 = arith.constant 0.797884583 : f32
    %248 = vector.broadcast %cst_97 : f32 to vector<16x64xf32>
    %249 = arith.mulf %248, %247 : vector<16x64xf32>
    %250 = math.tanh %249 : vector<16x64xf32>
    %cst_98 = arith.constant 1.000000e+00 : f32
    %251 = vector.broadcast %cst_98 : f32 to vector<16x64xf32>
    %252 = arith.addf %251, %250 : vector<16x64xf32>
    %253 = arith.mulf %242, %252 : vector<16x64xf32>
    %254 = arith.truncf %253 : vector<16x64xf32> to vector<16x64xbf16>
    %c1_99 = arith.constant 1 : index
    %c0_100 = arith.constant 0 : index
    %c0_101 = arith.constant 0 : index
    %255 = vector.load %arg9[%c1_99, %c0_100, %c0_101] : memref<2x64x32xbf16, #tpu.memory_space<vmem>>, vector<1x64x32xbf16>
    %256 = vector.shape_cast %255 : vector<1x64x32xbf16> to vector<64x32xbf16>
    %cst_102 = arith.constant dense<0.000000e+00> : vector<16x32xf32>
    %257 = tpu.matmul %254, %256, %cst_102 {dimension_numbers = #tpu.dot_dimension_numbers<[1], [0], [0], [1], [0, 0, 1, 1], [], []>} : vector<16x64xbf16>, vector<64x32xbf16>, vector<16x32xf32> -> vector<16x32xf32>
    %c1_103 = arith.constant 1 : index
    %c0_104 = arith.constant 0 : index
    %c0_105 = arith.constant 0 : index
    %258 = vector.load %arg10[%c1_103, %c0_104, %c0_105] : memref<2x1x32xf32, #tpu.memory_space<vmem>>, vector<1x1x32xf32>
    %259 = vector.shape_cast %258 : vector<1x1x32xf32> to vector<1x32xf32>
    %260 = vector.broadcast %259 : vector<1x32xf32> to vector<16x32xf32>
    %261 = arith.addf %257, %260 : vector<16x32xf32>
    %262 = arith.addf %232, %261 : vector<16x32xf32>
    %263 = vector.extract_strided_slice %164 {offsets = [2, 0], sizes = [1, 32], strides = [1, 1]} : vector<4x32xf32> to vector<1x32xf32>
    %264 = vector.extract_strided_slice %164 {offsets = [3, 0], sizes = [1, 32], strides = [1, 1]} : vector<4x32xf32> to vector<1x32xf32>
    %cst_106 = arith.constant dense<0.000000e+00> : vector<16xf32>
    %265 = vector.multi_reduction <add>, %262, %cst_106 [1] : vector<16x32xf32> to vector<16xf32>
    %266 = vector.shape_cast %265 : vector<16xf32> to vector<16x1xf32>
    %cst_107 = arith.constant 3.200000e+01 : f32
    %267 = vector.broadcast %cst_107 : f32 to vector<16x1xf32>
    %268 = arith.divf %266, %267 : vector<16x1xf32>
    %269 = arith.mulf %262, %262 : vector<16x32xf32>
    %cst_108 = arith.constant dense<0.000000e+00> : vector<16xf32>
    %270 = vector.multi_reduction <add>, %269, %cst_108 [1] : vector<16x32xf32> to vector<16xf32>
    %271 = vector.shape_cast %270 : vector<16xf32> to vector<16x1xf32>
    %cst_109 = arith.constant 3.200000e+01 : f32
    %272 = vector.broadcast %cst_109 : f32 to vector<16x1xf32>
    %273 = arith.divf %271, %272 : vector<16x1xf32>
    %274 = arith.mulf %268, %268 : vector<16x1xf32>
    %275 = arith.subf %273, %274 : vector<16x1xf32>
    %cst_110 = arith.constant 0.000000e+00 : f32
    %276 = vector.broadcast %cst_110 : f32 to vector<16x1xf32>
    %277 = arith.maximumf %275, %276 : vector<16x1xf32>
    %278 = vector.broadcast %268 : vector<16x1xf32> to vector<16x32xf32>
    %279 = arith.subf %262, %278 : vector<16x32xf32>
    %cst_111 = arith.constant 9.99999996E-13 : f32
    %280 = vector.broadcast %cst_111 : f32 to vector<16x1xf32>
    %281 = arith.addf %277, %280 : vector<16x1xf32>
    %282 = math.rsqrt %281 : vector<16x1xf32>
    %283 = vector.broadcast %282 : vector<16x1xf32> to vector<16x32xf32>
    %284 = arith.mulf %279, %283 : vector<16x32xf32>
    %285 = vector.broadcast %263 : vector<1x32xf32> to vector<16x32xf32>
    %286 = arith.mulf %284, %285 : vector<16x32xf32>
    %287 = vector.broadcast %264 : vector<1x32xf32> to vector<16x32xf32>
    %288 = arith.addf %286, %287 : vector<16x32xf32>
    %289 = arith.truncf %288 : vector<16x32xf32> to vector<16x32xbf16>
    %c0_112 = arith.constant 0 : index
    %c0_113 = arith.constant 0 : index
    %290 = vector.load %arg11[%c0_112, %c0_113] : memref<32x128xbf16, #tpu.memory_space<vmem>>, vector<32x128xbf16>
    %cst_114 = arith.constant dense<0.000000e+00> : vector<16x128xf32>
    %291 = tpu.matmul %289, %290, %cst_114 {dimension_numbers = #tpu.dot_dimension_numbers<[1], [0], [0], [1], [0, 0, 1, 1], [], []>} : vector<16x32xbf16>, vector<32x128xbf16>, vector<16x128xf32> -> vector<16x128xf32>
    %c0_115 = arith.constant 0 : index
    %c0_116 = arith.constant 0 : index
    %292 = vector.load %arg12[%c0_115, %c0_116] : memref<1x128xf32, #tpu.memory_space<vmem>>, vector<1x128xf32>
    %293 = vector.broadcast %292 : vector<1x128xf32> to vector<16x128xf32>
    %294 = arith.addf %291, %293 : vector<16x128xf32>
    %c0_117 = arith.constant 0 : index
    %c0_118 = arith.constant 0 : index
    %295 = vector.load %arg13[%c0_117, %c0_118] : memref<16x128xf32, #tpu.memory_space<vmem>>, vector<16x128xf32>
    tpu.vector_store %arg13[%c0_117, %c0_118], %294 {strides = array<i32>} : memref<16x128xf32, #tpu.memory_space<vmem>>, vector<16x128xf32>,
    return
  }
}

</mosaic_0001>

<bundles_post_ra>
// kernel: encoder_with_heads.1
= control target key start
LH: loop header
LB: loop body
LE: loop exit
PB: predicated region body
PF: predicated region fallthrough
CT: control target
= control target key end

     0   :  { %v1825_v1 = vmov 0.0   ;;  %vm1826_vm0 = vmmov 0   ;;  %vm100_vm1 = vcmask 261120   ;;  %s2223_s0 = inlined_call_operand.vmem [shape: f32[16,32], index: 0, kind: input, shape index: {}]   ;;  %s2224_s1 = inlined_call_operand.vmem [shape: f32[1,16], index: 1, kind: input, shape index: {}]   ;;  %s2225_s2 = inlined_call_operand.vmem [shape: bf16[2,32,96], index: 2, kind: input, shape index: {}]   ;;  %s2226_s3 = inlined_call_operand.vmem [shape: f32[2,1,96], index: 3, kind: input, shape index: {}]   ;;  %s2227_s4 = inlined_call_operand.vmem [shape: bf16[2,32,32], index: 4, kind: input, shape index: {}]   ;;  %s2228_s5 = inlined_call_operand.vmem [shape: f32[2,1,32], index: 5, kind: input, shape index: {}]   ;;  %s2229_s6 = inlined_call_operand.vmem [shape: f32[2,4,32], index: 6, kind: input, shape index: {}]   ;;  %s2230_s7 = inlined_call_operand.vmem [shape: bf16[2,32,64], index: 7, kind: input, shape index: {}]   ;;  %s2231_s8 = inlined_call_operand.vmem [shape: f32[2,1,64], index: 8, kind: input, shape index: {}]   ;;  %s2232_s9 = inlined_call_operand.vmem [shape: bf16[2,64,32], index: 9, kind: input, shape index: {}]   ;;  %s2233_s10 = inlined_call_operand.vmem [shape: f32[2,1,32], index: 10, kind: input, shape index: {}]   ;;  %s2234_s11 = inlined_call_operand.vmem [shape: bf16[32,128], index: 11, kind: input, shape index: {}]   ;;  %s2235_s12 = inlined_call_operand.vmem [shape: f32[1,128], index: 12, kind: input, shape index: {}]   ;;  %s2236_s13 = inlined_call_operand.hbm [shape: f32[16,128], index: 13, kind: output, shape index: {}]  }
   0x1   :  { %v1723_v0 = vld [vmem:[%s2225_s2] sm:$0xff]   ;;  %1574 = vmatprep.subr.bf16.mxu0 %v1825_v1  ;;  %1582 = vmatprep.subr.bf16.mxu1 %v1825_v1  ;;  %v1724_v2 = vld [vmem:[%s2225_s2 + $0x8] sm:$0xff]  }
   0x2   :  { %1575 = vmatpush3.bf16.msra.mxu0 %v1723_v0  ;;  %1578 = vmatprep.mubr.msk.bf16.mxu0 %vm1826_vm0, %v1825_v1  ;;  %v1919_v3 = vld [vmem:[%s2223_s0] sm:$0xff]  ;;  %v1924_v4 = vld [vmem:[%s2223_s0 + $0x8] sm:$0xff] }
   0x3   :  { %1576 = vmatprep.subr.bf16.mxu0 %v1825_v1  ;;  %1584 = vmatprep.mubr.msk.bf16.mxu1 %vm1826_vm0, %v1825_v1  ;;  %v76_v5 = vpack.c.bf16 %v1924_v4, %v1919_v3 }
   0x6   :  { %1577 = vmatpush3.bf16.msra.mxu0 %v1724_v2 }
   0x7   :  { %1588 = vmatprep.subr.bf16.mxu0 %v1825_v1 }
   0x9   :  { %1579 = vmatmul.mubr.msk.bf16.vlgmr.msra.gmra.mrb[0].mxu0 %vm100_vm1, %v76_v5 }
   0xa   :  { %1590 = vmatprep.mubr.msk.bf16.mxu0 %vm1826_vm0, %v1825_v1 }
   0xb   :  { %18 = vsyncpa [#allocation3], 0  ;;  %v1454_v6 = vld [vmem:[%s2226_s3] ss:$0 sm:$0xff]  ;;  %s1827_s17 = smov 112   ;;  %s1828_s18 = smov 96   ;;  %v48_v19 = vlaneseq }
   0xc   :  { %s1829_s19 = smov 80   ;;  %vm150_vm2 = vcmask 130048   ;;  %v1453_v42 = vld [vmem:[%s2224_s1] ss:$0 sm:$0xff]  ;;  %s1830_s1 = smov 48   ;;  %vm628_vm5 = vcmask 523264  }
   0xd   :  { %v1957_v20 = vshrl.u32 %v48_v19, 7  ;;  %v60_v21 = vand.u32 127, %v48_v19  ;;  %s1831_s22 = smov 64   ;;  %s1832_s27 = smov 16  }
   0xf   :  { %v50_v22 = vadd.s32 8, %v1957_v20  ;;  %v51_v23 = vcvt.s32.f32 %v1957_v20  ;;  %v61_v24 = vcvt.s32.f32 %v60_v21  ;;  %v1726_v21 = vld [vmem:[%s2227_s4 + $0x8] sm:$0xff]  }
  0x11   :  { %v52_v25 = vcvt.s32.f32 %v50_v22  ;;  %v53_v26 = vadd.f32 0.5, %v51_v23  ;;  %v62_v27 = vadd.f32 0.5, %v61_v24 }
  0x13   :  { %v54_v28 = vadd.f32 0.5, %v52_v25  ;;  %v55_v30 = vmul.f32 0.125, %v53_v26  ;;  %v63_v31 = vmul.f32 0.125, %v62_v27 }
  0x15   :  { %v56_v35 = vmul.f32 0.125, %v54_v28  ;;  %v57_v38 = vfloor.f32 %v55_v30  ;;  %v64_v39 = vfloor.f32 %v63_v31 }
  0x17   :  { %v58_v40 = vfloor.f32 %v56_v35  ;;  %vm65_vm3 = vcmp.eq.f32.partialorder %v57_v38, %v64_v39  ;;  %v1462_v35 = vld [vmem:[%s2228_s5] ss:$0 sm:$0xff] }
  0x18   :  { %v1964_v48 = vsel %vm65_vm3, %v1453_v42, 0.0 }
  0x19   :  { %vm66_vm4 = vcmp.eq.f32.partialorder %v58_v40, %v64_v39 }
  0x1a   :  { %v1966_v50 = vsel %vm66_vm4, %v1453_v42, 0.0 }
  0xdc   :  { %v138_v7 = vpop.f32.mrb[0].mxu0 }
  0xdd   :  { %v1580_v8 = vpop.f32.mrb[1].mxu0  ;;  %v139_v10 = vadd.f32 %v1454_v6, %v138_v7 }
  0xde   :  { %v141_v9 = vpop.f32.mrb[2].mxu0 }
  0xdf   :  { %v142_v11 = vadd.f32 %v1454_v6, %v141_v9  ;;  %v1581_v12 = vpop.f32.mrb[3].mxu0 }
  0xe1   :  { %v1938_v13 = vpack.c.bf16 %v142_v11, %v139_v10 }
  0xe3   :  { %262 = vrot.lane.b32.xlu1 %v1938_v13, %s1827_s17  ;;  %148 = vrot.lane.b32.xlu0 %v1938_v13, %s1828_s18 }
  0xe7   :  { %264 = vrot.lane.b32.xlu0 %v1938_v13, %s1829_s19 }
 0x155   :  { %v149_v14 = vpop.permute.xlu0 %148  ;;  %v263_v18 = vpop.permute.xlu1 %262 }
 0x156   :  { %v155_v15 = vsel %vm150_vm2, %v149_v14, 0 }
 0x157   :  { %1583 = vmatpush3.bf16.xpose.msra.mxu1 %v155_v15 }
 0x158   :  { %1594 = vmatprep.subr.bf16.mxu1 %v1825_v1 }
 0x159   :  { %v265_v16 = vpop.permute.xlu0 %264 }
 0x15a   :  { %v270_v17 = vsel %vm150_vm2, %v265_v16, 0 }
 0x15e   :  { %1585 = vmatmul.mubr.msk.bf16.vlgmr.msra.gmra.mrb[0].mxu1 %vm150_vm2, %v1938_v13 }
 0x15f   :  { %1595 = vmatpush3.bf16.xpose.msra.mxu1 %v270_v17  ;;  %1596 = vmatprep.mubr.msk.bf16.mxu1 %vm1826_vm0, %v1825_v1  ;;  %v1725_v17 = vld [vmem:[%s2227_s4] sm:$0xff]  }
 0x160   :  { %1606 = vmatprep.subr.bf16.mxu1 %v1825_v1 }
 0x166   :  { %1597 = vmatmul.mubr.msk.bf16.vlgmr.msra.gmra.mrb[4].mxu1 %vm150_vm2, %v263_v18 }
 0x167   :  { %1610 = vmatprep.mubr.msk.bf16.mxu1 %vm1826_vm0, %v1825_v1  ;;  %1607 = vmatpush3.bf16.msra.mxu1 %v1725_v17 }
 0x168   :  { %1608 = vmatprep.subr.bf16.mxu1 %v1825_v1 }
 0x16b   :  { %1609 = vmatpush3.bf16.msra.mxu1 %v1726_v21 }
 0x16c   :  { %1622 = vmatprep.subr.bf16.mxu1 %v1825_v1 }
 0x231   :  { %v191_v29 = vpop.f32.mrb[0].mxu1 }
 0x232   :  { %v198_v32 = vmul.f32 1.442695, %v191_v29  ;;  %v1586_v33 = vpop.f32.mrb[1].mxu1 }
 0x233   :  { %v194_v34 = vpop.f32.mrb[2].mxu1 }
 0x234   :  { %1745 = vpow2.f32 %v198_v32  ;;  %v200_v36 = vmul.f32 1.442695, %v194_v34  ;;  %v1587_v37 = vpop.f32.mrb[3].mxu1 }
 0x236   :  { %1747 = vpow2.f32 %v200_v36 }
 0x239   :  { %v306_v41 = vpop.f32.mrb[4].mxu1 }
 0x23a   :  { %v313_v43 = vmul.f32 1.442695, %v306_v41  ;;  %v1598_v44 = vpop.f32.mrb[5].mxu1 }
 0x23b   :  { %v309_v45 = vpop.f32.mrb[6].mxu1 }
 0x23c   :  { %1749 = vpow2.f32 %v313_v43  ;;  %v315_v46 = vmul.f32 1.442695, %v309_v45  ;;  %v1599_v47 = vpop.f32.mrb[7].mxu1 }
 0x23e   :  { %v1746_v49 = vpop.eup %1745  ;;  %1751 = vpow2.f32 %v315_v46 }
 0x23f   :  { %v202_v51 = vmul.f32 %v1746_v49, %v1964_v48 }
 0x240   :  { %v1748_v52 = vpop.eup %1747 }
 0x241   :  { %v204_v53 = vsel %vm150_vm2, %v202_v51, 0.0  ;;  %v203_v54 = vmul.f32 %v1748_v52, %v1966_v50 }
 0x242   :  { %205 = vadd.xlane.f32.xlu1 %v204_v53 }
 0x243   :  { %v207_v55 = vsel %vm150_vm2, %v203_v54, 0.0 }
 0x244   :  { %208 = vadd.xlane.f32.xlu0 %v207_v55 }
 0x246   :  { %v1750_v56 = vpop.eup %1749 }
 0x247   :  { %v317_v57 = vmul.f32 %v1750_v56, %v1964_v48 }
 0x248   :  { %v1752_v58 = vpop.eup %1751 }
 0x249   :  { %v319_v59 = vsel %vm150_vm2, %v317_v57, 0.0  ;;  %v318_v60 = vmul.f32 %v1752_v58, %v1966_v50 }
 0x24a   :  { %320 = vadd.xlane.f32.xlu0 %v319_v59 }
 0x24b   :  { %v322_v61 = vsel %vm150_vm2, %v318_v60, 0.0 }
 0x24c   :  { %323 = vadd.xlane.f32.xlu1 %v322_v61 }
 0x25d   :  { %330 = vrot.lane.b32.xlu1 %v1938_v13, %s1830_s1 }
 0x260   :  { %215 = vrot.lane.b32.xlu0 %v1938_v13, %s1831_s22 }
 0x2cf   :  { %v206_v62 = vpop.xlane.xlu1 %205 }
 0x2d0   :  { %1753 = vrcp.f32 %v206_v62 }
 0x2d1   :  { %v209_v63 = vpop.xlane.xlu0 %208 }
 0x2d2   :  { %1755 = vrcp.f32 %v209_v63 }
 0x2d7   :  { %v321_v0 = vpop.xlane.xlu0 %320 }
 0x2d8   :  { %1757 = vrcp.f32 %v321_v0 }
 0x2d9   :  { %v324_v2 = vpop.xlane.xlu1 %323 }
 0x2da   :  { %v1754_v5 = vpop.eup %1753  ;;  %1759 = vrcp.f32 %v324_v2 }
 0x2db   :  { %v216_v6 = vpop.permute.xlu0 %215  ;;  %v212_v8 = vmul.f32 %v1754_v5, %v202_v51 }
 0x2dc   :  { %v1756_v7 = vpop.eup %1755  ;;  %1589 = vmatpush3.bf16.msra.mxu0 %v216_v6 }
 0x2dd   :  { %v213_v9 = vmul.f32 %v1756_v7, %v203_v54  ;;  %1600 = vmatprep.subr.bf16.mxu0 %v1825_v1  ;;  %v331_v11 = vpop.permute.xlu1 %330  ;;  %v492_v7 = vsub.s32 0, %v1957_v20 }
 0x2df   :  { %v214_v10 = vpack.c.bf16 %v213_v9, %v212_v8  ;;  %v2023_v8 = vld [vmem:[%s2229_s6] sm:$0xf] }
 0x2e1   :  { %1591 = vmatmul.mubr.msk.bf16.vlgmr.msra.gmra.mrb[4].mxu0 %vm150_vm2, %v214_v10 }
 0x2e2   :  { %v1758_v12 = vpop.eup %1757  ;;  %1601 = vmatpush3.bf16.msra.mxu0 %v331_v11  ;;  %1602 = vmatprep.mubr.msk.bf16.mxu0 %vm1826_vm0, %v1825_v1 }
 0x2e3   :  { %1614 = vmatprep.subr.bf16.mxu0 %v1825_v1  ;;  %v327_v14 = vmul.f32 %v1758_v12, %v317_v57  ;;  %v493_v12 = vrot.slane %v2023_v8, %v492_v7 }
 0x2e4   :  { %v1760_v13 = vpop.eup %1759 }
 0x2e5   :  { %v328_v15 = vmul.f32 %v1760_v13, %v318_v60  ;;  %v498_v13 = vsub.s32 1, %v1957_v20 }
 0x2e7   :  { %v329_v16 = vpack.c.bf16 %v328_v15, %v327_v14 }
 0x2e9   :  { %1603 = vmatmul.mubr.msk.bf16.vlgmr.msra.gmra.mrb[8].mxu0 %vm150_vm2, %v329_v16 }
 0x2ea   :  { %1618 = vmatprep.mubr.msk.bf16.mxu0 %vm1826_vm0, %v1825_v1 }
 0x3b4   :  { %v255_v18 = vpop.f32.mrb[4].mxu0 }
 0x3b5   :  { %v1592_v19 = vpop.f32.mrb[5].mxu0 }
 0x3b6   :  { %v258_v22 = vpop.f32.mrb[6].mxu0 }
 0x3b7   :  { %v1593_v23 = vpop.f32.mrb[7].mxu0 }
 0x3bc   :  { %v370_v24 = vpop.f32.mrb[8].mxu0 }
 0x3bd   :  { %v1604_v25 = vpop.f32.mrb[9].mxu0 }
 0x3be   :  { %v373_v26 = vpop.f32.mrb[10].mxu0  ;;  %v1730_v25 = vld [vmem:[%s2232_s9 + $0x8] sm:$0xff]  }
 0x3bf   :  { %v1713_v27 = vpack.i.bf16 %v373_v26, %v370_v24  ;;  %v1605_v28 = vpop.f32.mrb[11].mxu0  ;;  %v1729_v24 = vld [vmem:[%s2232_s9] sm:$0xff]   ;;  %v1731_v26 = vld [vmem:[%s2232_s9 + $0x10] sm:$0xff]  }
 0x3c0   :  { %v1466_v28 = vld [vmem:[%s2231_s8] ss:$0 sm:$0xff] }
 0x3c1   :  { %1714 = vrot.lane.b32.xlu1 %v1713_v27, %s1832_s27  ;;  %v1732_v27 = vld [vmem:[%s2232_s9 + $0x18] sm:$0xff]  }
 0x433   :  { %v1715_v29 = vpop.permute.xlu1 %1714 }
 0x434   :  { %v1717_v30 = vunpack.i.h.bf16 %v1715_v29  ;;  %v1716_v31 = vunpack.i.l.bf16 %v1715_v29 }
 0x436   :  { %v386_v32 = vsel %vm150_vm2, %v258_v22, %v1717_v30  ;;  %v385_v33 = vsel %vm150_vm2, %v255_v18, %v1716_v31  ;;  %v499_v18 = vrot.slane %v2023_v8, %v498_v13 }
 0x437   :  { %v387_v34 = vpack.c.bf16 %v386_v32, %v385_v33 }
 0x439   :  { %1611 = vmatmul.mubr.msk.bf16.vlgmr.msra.gmra.mrb[8].mxu1 %vm100_vm1, %v387_v34 }
 0x43a   :  { %1630 = vmatprep.mubr.msk.bf16.mxu1 %vm1826_vm0, %v1825_v1  ;;  %1623 = vmatpush3.bf16.msra.mxu1 %v1729_v24 }
 0x43b   :  { %1624 = vmatprep.subr.bf16.mxu1 %v1825_v1 }
 0x43e   :  { %1625 = vmatpush3.bf16.msra.mxu1 %v1730_v25 }
 0x43f   :  { %1626 = vmatprep.subr.bf16.mxu1 %v1825_v1 }
 0x442   :  { %1627 = vmatpush3.bf16.msra.mxu1 %v1731_v26 }
 0x443   :  { %1628 = vmatprep.subr.bf16.mxu1 %v1825_v1 }
 0x446   :  { %1629 = vmatpush3.bf16.msra.mxu1 %v1732_v27 }
 0x447   :  { %1648 = vmatprep.subr.bf16.mxu1 %v1825_v1 }
 0x50c   :  { %v448_v36 = vpop.f32.mrb[8].mxu1 }
 0x50d   :  { %v449_v37 = vadd.f32 %v1462_v35, %v448_v36  ;;  %v1612_v38 = vpop.f32.mrb[9].mxu1 }
 0x50e   :  { %v451_v39 = vpop.f32.mrb[10].mxu1 }
 0x50f   :  { %v455_v40 = vadd.f32 %v449_v37, %v1919_v3  ;;  %v452_v41 = vadd.f32 %v1462_v35, %v451_v39  ;;  %v1613_v42 = vpop.f32.mrb[11].mxu1  ;;  %v1727_v3 = vld [vmem:[%s2230_s7] sm:$0xff]  }
 0x510   :  { %1615 = vmatpush3.bf16.msra.mxu0 %v1727_v3 }
 0x511   :  { %v456_v43 = vadd.f32 %v452_v41, %v1924_v4  ;;  %v457_v44 = vsel %vm100_vm1, %v455_v40, 0.0  ;;  %v466_v45 = vmul.f32 %v455_v40, %v455_v40  ;;  %v1728_v4 = vld [vmem:[%s2230_s7 + $0x8] sm:$0xff]   ;;  %1616 = vmatprep.subr.bf16.mxu0 %v1825_v1 }
 0x512   :  { %458 = vadd.xlane.f32.xlu0 %v457_v44 }
 0x513   :  { %v460_v46 = vsel %vm100_vm1, %v456_v43, 0.0  ;;  %v468_v47 = vsel %vm100_vm1, %v466_v45, 0.0  ;;  %v467_v49 = vmul.f32 %v456_v43, %v456_v43 }
 0x514   :  { %461 = vadd.xlane.f32.xlu1 %v460_v46  ;;  %1617 = vmatpush3.bf16.msra.mxu0 %v1728_v4 }
 0x515   :  { %v471_v51 = vsel %vm100_vm1, %v467_v49, 0.0  ;;  %1634 = vmatprep.subr.bf16.mxu0 %v1825_v1 }
 0x516   :  { %469 = vadd.xlane.f32.xlu0 %v468_v47 }
 0x51a   :  { %472 = vadd.xlane.f32.xlu0 %v471_v51 }
 0x59f   :  { %v459_v52 = vpop.xlane.xlu0 %458 }
 0x5a0   :  { %v464_v53 = vmul.f32 0.03125, %v459_v52 }
 0x5a1   :  { %v462_v54 = vpop.xlane.xlu1 %461 }
 0x5a2   :  { %v476_v56 = vmul.f32 %v464_v53, %v464_v53  ;;  %v465_v57 = vmul.f32 0.03125, %v462_v54  ;;  %v482_v9 = vsub.f32 %v455_v40, %v464_v53  ;;  %v1470_v54 = vld [vmem:[%s2233_s10] ss:$0 sm:$0xff] }
 0x5a3   :  { %v470_v55 = vpop.xlane.xlu0 %469 }
 0x5a4   :  { %v474_v58 = vmul.f32 0.03125, %v470_v55  ;;  %v477_v61 = vmul.f32 %v465_v57, %v465_v57  ;;  %v483_v14 = vsub.f32 %v456_v43, %v465_v57 }
 0x5a6   :  { %v478_v59 = vsub.f32 %v474_v58, %v476_v56 }
 0x5a7   :  { %v473_v60 = vpop.xlane.xlu0 %472 }
 0x5a8   :  { %v480_v62 = vmax.f32 %v478_v59, 0.0  ;;  %v475_v63 = vmul.f32 0.03125, %v473_v60 }
 0x5aa   :  { %v484_v0 = vadd.f32 1e-12, %v480_v62  ;;  %v479_v2 = vsub.f32 %v475_v63, %v477_v61 }
 0x5ac   :  { %1761 = vrsqrt.f32 %v484_v0  ;;  %v481_v5 = vmax.f32 %v479_v2, 0.0 }
 0x5ae   :  { %v485_v6 = vadd.f32 1e-12, %v481_v5 }
 0x5b0   :  { %1763 = vrsqrt.f32 %v485_v6 }
 0x5b6   :  { %v1762_v10 = vpop.eup %1761 }
 0x5b7   :  { %v488_v11 = vmul.f32 %v1762_v10, %v482_v9  ;;  %v1733_v10 = vld [vmem:[%s2225_s2 + $0x10] sm:$0xff]  }
 0x5b9   :  { %v494_v17 = vmul.f32 %v493_v12, %v488_v11  ;;  %v1734_v11 = vld [vmem:[%s2225_s2 + $0x18] sm:$0xff]  }
 0x5ba   :  { %v1764_v15 = vpop.eup %1763 }
 0x5bb   :  { %v489_v16 = vmul.f32 %v1764_v15, %v483_v14  ;;  %v500_v21 = vadd.f32 %v499_v18, %v494_v17 }
 0x5bd   :  { %v495_v19 = vmul.f32 %v493_v12, %v489_v16 }
 0x5bf   :  { %v501_v22 = vadd.f32 %v499_v18, %v495_v19 }
 0x5c1   :  { %v502_v23 = vpack.c.bf16 %v501_v22, %v500_v21 }
 0x5c3   :  { %1619 = vmatmul.mubr.msk.bf16.vlgmr.msra.gmra.mrb[12].mxu0 %vm100_vm1, %v502_v23 }
 0x5c4   :  { %1638 = vmatprep.mubr.msk.bf16.mxu0 %vm1826_vm0, %v1825_v1  ;;  %1635 = vmatpush3.bf16.msra.mxu0 %v1733_v10 }
 0x5c5   :  { %1636 = vmatprep.subr.bf16.mxu0 %v1825_v1 }
 0x5c8   :  { %1637 = vmatpush3.bf16.msra.mxu0 %v1734_v11 }
 0x5c9   :  { %1642 = vmatprep.subr.bf16.mxu0 %v1825_v1 }
 0x696   :  { %v563_v29 = vpop.f32.mrb[12].mxu0 }
 0x697   :  { %v564_v30 = vadd.f32 %v1466_v28, %v563_v29  ;;  %v1620_v31 = vpop.f32.mrb[13].mxu0 }
 0x698   :  { %v566_v32 = vpop.f32.mrb[14].mxu0 }
 0x699   :  { %v572_v33 = vmul.f32 0.044715, %v564_v30  ;;  %v567_v34 = vadd.f32 %v1466_v28, %v566_v32  ;;  %v1621_v35 = vpop.f32.mrb[15].mxu0  ;;  %v570_v49 = vmul.f32 0.5, %v564_v30 }
 0x69b   :  { %v574_v36 = vmul.f32 %v572_v33, %v564_v30  ;;  %v573_v37 = vmul.f32 0.044715, %v567_v34  ;;  %v571_v51 = vmul.f32 0.5, %v567_v34  ;;  %v715_v33 = vsub.s32 3, %v1957_v20 }
 0x69d   :  { %v576_v38 = vmul.f32 %v574_v36, %v564_v30  ;;  %v575_v39 = vmul.f32 %v573_v37, %v567_v34 }
 0x69f   :  { %v578_v40 = vadd.f32 %v576_v38, %v564_v30  ;;  %v577_v41 = vmul.f32 %v575_v39, %v567_v34  ;;  %v709_v30 = vsub.s32 2, %v1957_v20 }
 0x6a1   :  { %v580_v42 = vmul.f32 0.7978846, %v578_v40  ;;  %v579_v43 = vadd.f32 %v577_v41, %v567_v34  ;;  %v710_v32 = vrot.slane %v2023_v8, %v709_v30  ;;  %v716_v40 = vrot.slane %v2023_v8, %v715_v33 }
 0x6a3   :  { %1765 = vtanh.f32 %v580_v42  ;;  %v581_v44 = vmul.f32 0.7978846, %v579_v43 }
 0x6a5   :  { %1767 = vtanh.f32 %v581_v44 }
 0x6ad   :  { %v1766_v45 = vpop.eup %1765 }
 0x6ae   :  { %v584_v46 = vadd.f32 1.0, %v1766_v45  ;;  %v1481_v45 = vld [vmem:[%s2226_s3 + $0x1] ss:$0 sm:$0xff] }
 0x6af   :  { %v1768_v47 = vpop.eup %1767 }
 0x6b0   :  { %v585_v3 = vadd.f32 1.0, %v1768_v47  ;;  %v586_v4 = vmul.f32 %v584_v46, %v570_v49 }
 0x6b2   :  { %v587_v52 = vmul.f32 %v585_v3, %v571_v51 }
 0x6b4   :  { %v588_v53 = vpack.c.bf16 %v587_v52, %v586_v4 }
 0x6b6   :  { %1631 = vmatmul.mubr.msk.bf16.vlgmr.msra.gmra.mrb[12].mxu1 %vm628_vm5, %v588_v53 }
 0x6b7   :  { %1650 = vmatprep.mubr.msk.bf16.mxu1 %vm1826_vm0, %v1825_v1 }
 0x789   :  { %v666_v55 = vpop.f32.mrb[12].mxu1 }
 0x78a   :  { %v667_v56 = vadd.f32 %v1470_v54, %v666_v55  ;;  %v1632_v57 = vpop.f32.mrb[13].mxu1 }
 0x78b   :  { %v669_v58 = vpop.f32.mrb[14].mxu1 }
 0x78c   :  { %v673_v59 = vadd.f32 %v667_v56, %v500_v21  ;;  %v670_v60 = vadd.f32 %v1470_v54, %v669_v58  ;;  %v1633_v61 = vpop.f32.mrb[15].mxu1 }
 0x78e   :  { %v674_v62 = vadd.f32 %v670_v60, %v501_v22  ;;  %v675_v63 = vsel %vm100_vm1, %v673_v59, 0.0  ;;  %v683_v0 = vmul.f32 %v673_v59, %v673_v59 }
 0x78f   :  { %676 = vadd.xlane.f32.xlu1 %v675_v63 }
 0x790   :  { %v678_v2 = vsel %vm100_vm1, %v674_v62, 0.0  ;;  %v684_v5 = vmul.f32 %v674_v62, %v674_v62  ;;  %v685_v6 = vsel %vm100_vm1, %v683_v0, 0.0 }
 0x791   :  { %679 = vadd.xlane.f32.xlu0 %v678_v2 }
 0x792   :  { %v688_v9 = vsel %vm100_vm1, %v684_v5, 0.0 }
 0x793   :  { %686 = vadd.xlane.f32.xlu1 %v685_v6 }
 0x795   :  { %689 = vadd.xlane.f32.xlu0 %v688_v9 }
 0x81c   :  { %v677_v12 = vpop.xlane.xlu1 %676 }
 0x81d   :  { %v681_v14 = vmul.f32 0.03125, %v677_v12 }
 0x81e   :  { %v680_v15 = vpop.xlane.xlu0 %679 }
 0x81f   :  { %v682_v16 = vmul.f32 0.03125, %v680_v15  ;;  %v693_v18 = vmul.f32 %v681_v14, %v681_v14  ;;  %v699_v31 = vsub.f32 %v673_v59, %v681_v14 }
 0x820   :  { %v687_v17 = vpop.xlane.xlu1 %686 }
 0x821   :  { %v691_v19 = vmul.f32 0.03125, %v687_v17  ;;  %v694_v22 = vmul.f32 %v682_v16, %v682_v16  ;;  %v700_v35 = vsub.f32 %v674_v62, %v682_v16 }
 0x822   :  { %v690_v21 = vpop.xlane.xlu0 %689 }
 0x823   :  { %v695_v23 = vsub.f32 %v691_v19, %v693_v18  ;;  %v692_v24 = vmul.f32 0.03125, %v690_v21 }
 0x825   :  { %v697_v25 = vmax.f32 %v695_v23, 0.0  ;;  %v696_v26 = vsub.f32 %v692_v24, %v694_v22 }
 0x827   :  { %v701_v27 = vadd.f32 1e-12, %v697_v25  ;;  %v698_v28 = vmax.f32 %v696_v26, 0.0 }
 0x829   :  { %1769 = vrsqrt.f32 %v701_v27  ;;  %v702_v29 = vadd.f32 1e-12, %v698_v28 }
 0x82b   :  { %1771 = vrsqrt.f32 %v702_v29 }
 0x833   :  { %v1770_v34 = vpop.eup %1769 }
 0x834   :  { %v705_v36 = vmul.f32 %v1770_v34, %v699_v31 }
 0x835   :  { %v1772_v37 = vpop.eup %1771 }
 0x836   :  { %v706_v38 = vmul.f32 %v1772_v37, %v700_v35  ;;  %v711_v39 = vmul.f32 %v710_v32, %v705_v36 }
 0x838   :  { %v712_v41 = vmul.f32 %v710_v32, %v706_v38  ;;  %v2080_v42 = vadd.f32 %v716_v40, %v711_v39 }
 0x83a   :  { %v2082_v43 = vadd.f32 %v716_v40, %v712_v41  ;;  %v1735_v40 = vld [vmem:[%s2227_s4 + $0x10] sm:$0xff]  }
 0x83c   :  { %v719_v44 = vpack.c.bf16 %v2082_v43, %v2080_v42 }
 0x83e   :  { %1639 = vmatmul.mubr.msk.bf16.vlgmr.msra.gmra.mrb[16].mxu0 %vm100_vm1, %v719_v44 }
 0x83f   :  { %1644 = vmatprep.mubr.msk.bf16.mxu0 %vm1826_vm0, %v1825_v1 }
 0x911   :  { %v782_v46 = vpop.f32.mrb[16].mxu0 }
 0x912   :  { %v1640_v47 = vpop.f32.mrb[17].mxu0  ;;  %v783_v49 = vadd.f32 %v1481_v45, %v782_v46 }
 0x913   :  { %v785_v8 = vpop.f32.mrb[18].mxu0 }
 0x914   :  { %v786_v51 = vadd.f32 %v1481_v45, %v785_v8  ;;  %v1641_v3 = vpop.f32.mrb[19].mxu0  ;;  %v1736_v45 = vld [vmem:[%s2227_s4 + $0x18] sm:$0xff]  }
 0x916   :  { %v791_v4 = vpack.c.bf16 %v786_v51, %v783_v49 }
 0x918   :  { %908 = vrot.lane.b32.xlu0 %v791_v4, %s1829_s19  ;;  %793 = vrot.lane.b32.xlu1 %v791_v4, %s1828_s18 }
 0x91c   :  { %906 = vrot.lane.b32.xlu1 %v791_v4, %s1827_s17  ;;  %s1833_s17 = smov [#allocation2]  }
 0x91d   :  { %s1442_s18 = sshll.u32 %s1833_s17, 4  ;;  %s1443_s18 = int_to_ptr.vmem [resolvable:$true] %s1442_s18 }
 0x91e   :  { %s1801_s19 = scalar_lea.vmem %s1443_s18, 256  ;;  %p1806_p1 = scmp.lt.s32.totalorder %s1443_s18, %s1443_s18 }
 0x91f   :  { %p1802_p0 = scmp.ne.s32.totalorder %s1443_s18, %s1801_s19  ;;  %p1807_p2 = scmp.lt.s32.totalorder %s1801_s19, %s1801_s19 }
 0x921   :  { %p1808_p3 = por %p1807_p2, %p1806_p1 }
 0x923   :  { %p1809_p4 = pnand %p1808_p3, %p1802_p0 }
 0x98a   :  { %v794_v52 = vpop.permute.xlu1 %793  ;;  %v909_v54 = vpop.permute.xlu0 %908 }
 0x98b   :  { %v799_v53 = vsel %vm150_vm2, %v794_v52, 0  ;;  %v914_v55 = vsel %vm150_vm2, %v909_v54, 0 }
 0x98c   :  { %1643 = vmatpush3.bf16.xpose.msra.mxu0 %v799_v53 }
 0x98d   :  { %1654 = vmatprep.subr.bf16.mxu0 %v1825_v1 }
 0x98e   :  { %v907_v56 = vpop.permute.xlu1 %906 }
 0x993   :  { %1645 = vmatmul.mubr.msk.bf16.vlgmr.msra.gmra.mrb[20].mxu0 %vm150_vm2, %v791_v4 }
 0x994   :  { %1655 = vmatpush3.bf16.xpose.msra.mxu0 %v914_v55  ;;  %1656 = vmatprep.mubr.msk.bf16.mxu0 %vm1826_vm0, %v1825_v1 }
 0x995   :  { %1666 = vmatprep.subr.bf16.mxu0 %v1825_v1 }
 0x99b   :  { %1657 = vmatmul.mubr.msk.bf16.vlgmr.msra.gmra.mrb[24].mxu0 %vm150_vm2, %v907_v56 }
 0x99c   :  { %1670 = vmatprep.mubr.msk.bf16.mxu0 %vm1826_vm0, %v1825_v1  ;;  %1667 = vmatpush3.bf16.msra.mxu0 %v1735_v40 }
 0x99d   :  { %1668 = vmatprep.subr.bf16.mxu0 %v1825_v1 }
 0x9a0   :  { %1669 = vmatpush3.bf16.msra.mxu0 %v1736_v45 }
 0x9a1   :  { %1682 = vmatprep.subr.bf16.mxu0 %v1825_v1 }
 0xa66   :  { %v835_v57 = vpop.f32.mrb[20].mxu0 }
 0xa67   :  { %v842_v58 = vmul.f32 1.442695, %v835_v57  ;;  %v1646_v59 = vpop.f32.mrb[21].mxu0 }
 0xa68   :  { %v838_v60 = vpop.f32.mrb[22].mxu0 }
 0xa69   :  { %1773 = vpow2.f32 %v842_v58  ;;  %v844_v61 = vmul.f32 1.442695, %v838_v60  ;;  %v1647_v62 = vpop.f32.mrb[23].mxu0  ;;  %v1495_v58 = vld [vmem:[%s2228_s5 + $0x1] ss:$0 sm:$0xff] }
 0xa6b   :  { %1775 = vpow2.f32 %v844_v61 }
 0xa6e   :  { %v950_v63 = vpop.f32.mrb[24].mxu0 }
 0xa6f   :  { %v957_v0 = vmul.f32 1.442695, %v950_v63  ;;  %v1658_v2 = vpop.f32.mrb[25].mxu0 }
 0xa70   :  { %v953_v5 = vpop.f32.mrb[26].mxu0 }
 0xa71   :  { %1777 = vpow2.f32 %v957_v0  ;;  %v959_v6 = vmul.f32 1.442695, %v953_v5  ;;  %v1659_v9 = vpop.f32.mrb[27].mxu0 }
 0xa73   :  { %v1774_v10 = vpop.eup %1773  ;;  %1779 = vpow2.f32 %v959_v6 }
 0xa74   :  { %v846_v11 = vmul.f32 %v1774_v10, %v1964_v48 }
 0xa75   :  { %v1776_v12 = vpop.eup %1775 }
 0xa76   :  { %v848_v14 = vsel %vm150_vm2, %v846_v11, 0.0  ;;  %v847_v15 = vmul.f32 %v1776_v12, %v1966_v50 }
 0xa77   :  { %849 = vadd.xlane.f32.xlu1 %v848_v14 }
 0xa78   :  { %v851_v16 = vsel %vm150_vm2, %v847_v15, 0.0 }
 0xa79   :  { %852 = vadd.xlane.f32.xlu0 %v851_v16 }
 0xa7b   :  { %v1778_v17 = vpop.eup %1777 }
 0xa7c   :  { %v961_v18 = vmul.f32 %v1778_v17, %v1964_v48 }
 0xa7d   :  { %v1780_v19 = vpop.eup %1779 }
 0xa7e   :  { %v963_v21 = vsel %vm150_vm2, %v961_v18, 0.0  ;;  %v962_v22 = vmul.f32 %v1780_v19, %v1966_v50 }
 0xa7f   :  { %964 = vadd.xlane.f32.xlu0 %v963_v21 }
 0xa80   :  { %v966_v23 = vsel %vm150_vm2, %v962_v22, 0.0 }
 0xa81   :  { %967 = vadd.xlane.f32.xlu1 %v966_v23 }
 0xa92   :  { %974 = vrot.lane.b32.xlu1 %v791_v4, %s1830_s1 }
 0xa95   :  { %859 = vrot.lane.b32.xlu0 %v791_v4, %s1831_s22 }
 0xb04   :  { %v850_v24 = vpop.xlane.xlu1 %849 }
 0xb05   :  { %1781 = vrcp.f32 %v850_v24 }
 0xb06   :  { %v853_v25 = vpop.xlane.xlu0 %852 }
 0xb07   :  { %1783 = vrcp.f32 %v853_v25 }
 0xb0c   :  { %v965_v26 = vpop.xlane.xlu0 %964 }
 0xb0d   :  { %1785 = vrcp.f32 %v965_v26 }
 0xb0e   :  { %v968_v48 = vpop.xlane.xlu1 %967 }
 0xb0f   :  { %v1782_v27 = vpop.eup %1781  ;;  %1787 = vrcp.f32 %v968_v48 }
 0xb10   :  { %v860_v28 = vpop.permute.xlu0 %859  ;;  %v856_v50 = vmul.f32 %v1782_v27, %v846_v11 }
 0xb11   :  { %v1784_v29 = vpop.eup %1783  ;;  %1649 = vmatpush3.bf16.msra.mxu1 %v860_v28 }
 0xb12   :  { %v857_v31 = vmul.f32 %v1784_v29, %v847_v15  ;;  %1660 = vmatprep.subr.bf16.mxu1 %v1825_v1  ;;  %v975_v34 = vpop.permute.xlu1 %974 }
 0xb14   :  { %v858_v32 = vpack.c.bf16 %v857_v31, %v856_v50  ;;  %v2157_v31 = vld [vmem:[%s2229_s6 + $0x4] sm:$0xf] }
 0xb16   :  { %1651 = vmatmul.mubr.msk.bf16.vlgmr.msra.gmra.mrb[16].mxu1 %vm150_vm2, %v858_v32 }
 0xb17   :  { %v1786_v35 = vpop.eup %1785  ;;  %1661 = vmatpush3.bf16.msra.mxu1 %v975_v34  ;;  %1662 = vmatprep.mubr.msk.bf16.mxu1 %vm1826_vm0, %v1825_v1 }
 0xb18   :  { %1674 = vmatprep.subr.bf16.mxu1 %v1825_v1  ;;  %v971_v37 = vmul.f32 %v1786_v35, %v961_v18 }
 0xb19   :  { %v1788_v36 = vpop.eup %1787 }
 0xb1a   :  { %v972_v38 = vmul.f32 %v1788_v36, %v962_v22  ;;  %v1138_v36 = vrot.slane %v2157_v31, %v492_v7  ;;  %v1739_v7 = vld [vmem:[%s2232_s9 + $0x20] sm:$0xff]  }
 0xb1c   :  { %v973_v39 = vpack.c.bf16 %v972_v38, %v971_v37 }
 0xb1e   :  { %1663 = vmatmul.mubr.msk.bf16.vlgmr.msra.gmra.mrb[20].mxu1 %vm150_vm2, %v973_v39 }
 0xb1f   :  { %1678 = vmatprep.mubr.msk.bf16.mxu1 %vm1826_vm0, %v1825_v1 }
 0xbe9   :  { %v899_v41 = vpop.f32.mrb[16].mxu1 }
 0xbea   :  { %v1652_v44 = vpop.f32.mrb[17].mxu1 }
 0xbeb   :  { %v902_v46 = vpop.f32.mrb[18].mxu1 }
 0xbec   :  { %v1653_v47 = vpop.f32.mrb[19].mxu1 }
 0xbf1   :  { %v1014_v8 = vpop.f32.mrb[20].mxu1 }
 0xbf2   :  { %v1664_v49 = vpop.f32.mrb[21].mxu1 }
 0xbf3   :  { %v1017_v51 = vpop.f32.mrb[22].mxu1  ;;  %v1742_v49 = vld [vmem:[%s2232_s9 + $0x38] sm:$0xff]  }
 0xbf4   :  { %v1718_v3 = vpack.i.bf16 %v1017_v51, %v1014_v8  ;;  %v1665_v4 = vpop.f32.mrb[23].mxu1  ;;  %v1740_v8 = vld [vmem:[%s2232_s9 + $0x28] sm:$0xff]   ;;  %v1504_v51 = vld [vmem:[%s2231_s8 + $0x1] ss:$0 sm:$0xff] }
 0xbf6   :  { %1719 = vrot.lane.b32.xlu1 %v1718_v3, %s1832_s27 }
 0xc68   :  { %v1720_v52 = vpop.permute.xlu1 %1719 }
 0xc69   :  { %v1722_v53 = vunpack.i.h.bf16 %v1720_v52  ;;  %v1721_v54 = vunpack.i.l.bf16 %v1720_v52 }
 0xc6b   :  { %v1030_v55 = vsel %vm150_vm2, %v902_v46, %v1722_v53  ;;  %v1029_v56 = vsel %vm150_vm2, %v899_v41, %v1721_v54  ;;  %v1144_v41 = vrot.slane %v2157_v31, %v498_v13  ;;  %v1741_v13 = vld [vmem:[%s2232_s9 + $0x30] sm:$0xff]  }
 0xc6c   :  { %v1031_v57 = vpack.c.bf16 %v1030_v55, %v1029_v56 }
 0xc6e   :  { %1671 = vmatmul.mubr.msk.bf16.vlgmr.msra.gmra.mrb[28].mxu0 %vm100_vm1, %v1031_v57 }
 0xc6f   :  { %1690 = vmatprep.mubr.msk.bf16.mxu0 %vm1826_vm0, %v1825_v1  ;;  %1683 = vmatpush3.bf16.msra.mxu0 %v1739_v7 }
 0xc70   :  { %1684 = vmatprep.subr.bf16.mxu0 %v1825_v1 }
 0xc73   :  { %1685 = vmatpush3.bf16.msra.mxu0 %v1740_v8 }
 0xc74   :  { %1686 = vmatprep.subr.bf16.mxu0 %v1825_v1 }
 0xc77   :  { %1687 = vmatpush3.bf16.msra.mxu0 %v1741_v13 }
 0xc78   :  { %1688 = vmatprep.subr.bf16.mxu0 %v1825_v1 }
 0xc7b   :  { %1689 = vmatpush3.bf16.msra.mxu0 %v1742_v49 }
 0xd41   :  { %v1094_v59 = vpop.f32.mrb[28].mxu0 }
 0xd42   :  { %v1095_v60 = vadd.f32 %v1495_v58, %v1094_v59  ;;  %v1672_v61 = vpop.f32.mrb[29].mxu0 }
 0xd43   :  { %v1097_v62 = vpop.f32.mrb[30].mxu0 }
 0xd44   :  { %v1101_v63 = vadd.f32 %v1095_v60, %v2080_v42  ;;  %v1098_v0 = vadd.f32 %v1495_v58, %v1097_v62  ;;  %v1673_v2 = vpop.f32.mrb[31].mxu0  ;;  %v1737_v42 = vld [vmem:[%s2230_s7 + $0x10] sm:$0xff]  }
 0xd45   :  { %1675 = vmatpush3.bf16.msra.mxu1 %v1737_v42 }
 0xd46   :  { %v1102_v5 = vadd.f32 %v1098_v0, %v2082_v43  ;;  %v1103_v6 = vsel %vm100_vm1, %v1101_v63, 0.0  ;;  %v1111_v9 = vmul.f32 %v1101_v63, %v1101_v63  ;;  %v1738_v43 = vld [vmem:[%s2230_s7 + $0x18] sm:$0xff]   ;;  %1676 = vmatprep.subr.bf16.mxu1 %v1825_v1 }
 0xd47   :  { %1104 = vadd.xlane.f32.xlu0 %v1103_v6 }
 0xd48   :  { %v1106_v10 = vsel %vm100_vm1, %v1102_v5, 0.0  ;;  %v1113_v11 = vsel %vm100_vm1, %v1111_v9, 0.0  ;;  %v1112_v12 = vmul.f32 %v1102_v5, %v1102_v5 }
 0xd49   :  { %1107 = vadd.xlane.f32.xlu1 %v1106_v10  ;;  %1677 = vmatpush3.bf16.msra.mxu1 %v1738_v43 }
 0xd4a   :  { %v1116_v14 = vsel %vm100_vm1, %v1112_v12, 0.0  ;;  %1694 = vmatprep.subr.bf16.mxu1 %v1825_v1 }
 0xd4b   :  { %1114 = vadd.xlane.f32.xlu0 %v1113_v11 }
 0xd4f   :  { %1117 = vadd.xlane.f32.xlu0 %v1116_v14 }
 0xdd4   :  { %v1105_v15 = vpop.xlane.xlu0 %1104 }
 0xdd5   :  { %v1109_v16 = vmul.f32 0.03125, %v1105_v15  ;;  %v1517_v15 = vld [vmem:[%s2233_s10 + $0x1] ss:$0 sm:$0xff] }
 0xdd6   :  { %v1108_v17 = vpop.xlane.xlu1 %1107 }
 0xdd7   :  { %v1121_v19 = vmul.f32 %v1109_v16, %v1109_v16  ;;  %v1110_v21 = vmul.f32 0.03125, %v1108_v17  ;;  %v1127_v32 = vsub.f32 %v1101_v63, %v1109_v16 }
 0xdd8   :  { %v1115_v18 = vpop.xlane.xlu0 %1114 }
 0xdd9   :  { %v1119_v22 = vmul.f32 0.03125, %v1115_v18  ;;  %v1122_v25 = vmul.f32 %v1110_v21, %v1110_v21  ;;  %v1128_v37 = vsub.f32 %v1102_v5, %v1110_v21 }
 0xddb   :  { %v1123_v23 = vsub.f32 %v1119_v22, %v1121_v19 }
 0xddc   :  { %v1118_v24 = vpop.xlane.xlu0 %1117 }
 0xddd   :  { %v1125_v26 = vmax.f32 %v1123_v23, 0.0  ;;  %v1120_v48 = vmul.f32 0.03125, %v1118_v24 }
 0xddf   :  { %v1129_v27 = vadd.f32 1e-12, %v1125_v26  ;;  %v1124_v28 = vsub.f32 %v1120_v48, %v1122_v25 }
 0xde1   :  { %1789 = vrsqrt.f32 %v1129_v27  ;;  %v1126_v29 = vmax.f32 %v1124_v28, 0.0 }
 0xde3   :  { %v1130_v50 = vadd.f32 1e-12, %v1126_v29 }
 0xde5   :  { %1791 = vrsqrt.f32 %v1130_v50  ;;  %v1743_v50 = vld [vmem:[%s2234_s11] sm:$0xff]  }
 0xdeb   :  { %v1790_v34 = vpop.eup %1789 }
 0xdec   :  { %v1133_v35 = vmul.f32 %v1790_v34, %v1127_v32  ;;  %v1744_v32 = vld [vmem:[%s2234_s11 + $0x8] sm:$0xff]  }
 0xdee   :  { %v1139_v40 = vmul.f32 %v1138_v36, %v1133_v35 }
 0xdef   :  { %v1792_v38 = vpop.eup %1791 }
 0xdf0   :  { %v1134_v39 = vmul.f32 %v1792_v38, %v1128_v37  ;;  %v1145_v45 = vadd.f32 %v1144_v41, %v1139_v40 }
 0xdf2   :  { %v1140_v44 = vmul.f32 %v1138_v36, %v1134_v39 }
 0xdf4   :  { %v1146_v46 = vadd.f32 %v1144_v41, %v1140_v44 }
 0xdf6   :  { %v1147_v47 = vpack.c.bf16 %v1146_v46, %v1145_v45 }
 0xdf8   :  { %1679 = vmatmul.mubr.msk.bf16.vlgmr.msra.gmra.mrb[24].mxu1 %vm100_vm1, %v1147_v47 }
 0xdf9   :  { %1698 = vmatprep.mubr.msk.bf16.mxu1 %vm1826_vm0, %v1825_v1  ;;  %1695 = vmatpush3.bf16.msra.mxu1 %v1743_v50 }
 0xdfa   :  { %1696 = vmatprep.subr.bf16.mxu1 %v1825_v1 }
 0xdfd   :  { %1697 = vmatpush3.bf16.msra.mxu1 %v1744_v32 }
 0xecb   :  { %v1210_v3 = vpop.f32.mrb[24].mxu1 }
 0xecc   :  { %v1211_v4 = vadd.f32 %v1504_v51, %v1210_v3  ;;  %v1680_v52 = vpop.f32.mrb[25].mxu1 }
 0xecd   :  { %v1213_v53 = vpop.f32.mrb[26].mxu1 }
 0xece   :  { %v1219_v54 = vmul.f32 0.044715, %v1211_v4  ;;  %v1214_v55 = vadd.f32 %v1504_v51, %v1213_v53  ;;  %v1681_v56 = vpop.f32.mrb[27].mxu1  ;;  %v1217_v10 = vmul.f32 0.5, %v1211_v4  ;;  %v1358_v51 = vrot.slane %v2157_v31, %v709_v30  ;;  %v1523_v30 = vld [vmem:[%s2235_s12] ss:$0 sm:$0xff] }
 0xecf   :  { %v1364_v56 = vrot.slane %v2157_v31, %v715_v33 }
 0xed0   :  { %v1221_v57 = vmul.f32 %v1219_v54, %v1211_v4  ;;  %v1220_v58 = vmul.f32 0.044715, %v1214_v55  ;;  %v1218_v11 = vmul.f32 0.5, %v1214_v55 }
 0xed2   :  { %v1223_v59 = vmul.f32 %v1221_v57, %v1211_v4  ;;  %v1222_v60 = vmul.f32 %v1220_v58, %v1214_v55 }
 0xed4   :  { %v1225_v61 = vadd.f32 %v1223_v59, %v1211_v4  ;;  %v1224_v62 = vmul.f32 %v1222_v60, %v1214_v55 }
 0xed6   :  { %v1227_v63 = vmul.f32 0.7978846, %v1225_v61  ;;  %v1226_v0 = vadd.f32 %v1224_v62, %v1214_v55 }
 0xed8   :  { %1793 = vtanh.f32 %v1227_v63  ;;  %v1228_v2 = vmul.f32 0.7978846, %v1226_v0 }
 0xeda   :  { %1795 = vtanh.f32 %v1228_v2 }
 0xee2   :  { %v1794_v5 = vpop.eup %1793 }
 0xee3   :  { %v1231_v6 = vadd.f32 1.0, %v1794_v5 }
 0xee4   :  { %v1796_v9 = vpop.eup %1795 }
 0xee5   :  { %v1232_v12 = vadd.f32 1.0, %v1796_v9  ;;  %v1233_v14 = vmul.f32 %v1231_v6, %v1217_v10 }
 0xee7   :  { %v1234_v42 = vmul.f32 %v1232_v12, %v1218_v11 }
 0xee9   :  { %v1235_v43 = vpack.c.bf16 %v1234_v42, %v1233_v14 }
 0xeeb   :  { %1691 = vmatmul.mubr.msk.bf16.vlgmr.msra.gmra.mrb[32].mxu0 %vm628_vm5, %v1235_v43 }
 0xfbe   :  { %v1314_v16 = vpop.f32.mrb[32].mxu0 }
 0xfbf   :  { %v1315_v17 = vadd.f32 %v1517_v15, %v1314_v16  ;;  %v1692_v18 = vpop.f32.mrb[33].mxu0 }
 0xfc0   :  { %v1317_v19 = vpop.f32.mrb[34].mxu0 }
 0xfc1   :  { %v1321_v21 = vadd.f32 %v1315_v17, %v1145_v45  ;;  %v1318_v22 = vadd.f32 %v1517_v15, %v1317_v19  ;;  %v1693_v23 = vpop.f32.mrb[35].mxu0 }
 0xfc3   :  { %v1322_v24 = vadd.f32 %v1318_v22, %v1146_v46  ;;  %v1323_v25 = vsel %vm100_vm1, %v1321_v21, 0.0  ;;  %v1331_v26 = vmul.f32 %v1321_v21, %v1321_v21 }
 0xfc4   :  { %1324 = vadd.xlane.f32.xlu1 %v1323_v25 }
 0xfc5   :  { %v1326_v48 = vsel %vm100_vm1, %v1322_v24, 0.0  ;;  %v1332_v27 = vmul.f32 %v1322_v24, %v1322_v24  ;;  %v1333_v28 = vsel %vm100_vm1, %v1331_v26, 0.0 }
 0xfc6   :  { %1327 = vadd.xlane.f32.xlu0 %v1326_v48 }
 0xfc7   :  { %v1336_v29 = vsel %vm100_vm1, %v1332_v27, 0.0 }
 0xfc8   :  { %1334 = vadd.xlane.f32.xlu1 %v1333_v28 }
 0xfca   :  { %1337 = vadd.xlane.f32.xlu0 %v1336_v29 }
0x1051   :  { %v1325_v34 = vpop.xlane.xlu1 %1324 }
0x1052   :  { %v1329_v35 = vmul.f32 0.03125, %v1325_v34 }
0x1053   :  { %v1328_v36 = vpop.xlane.xlu0 %1327 }
0x1054   :  { %v1330_v37 = vmul.f32 0.03125, %v1328_v36  ;;  %v1341_v39 = vmul.f32 %v1329_v35, %v1329_v35  ;;  %v1347_v1 = vsub.f32 %v1321_v21, %v1329_v35 }
0x1055   :  { %v1335_v38 = vpop.xlane.xlu1 %1334 }
0x1056   :  { %v1339_v40 = vmul.f32 0.03125, %v1335_v38  ;;  %v1342_v44 = vmul.f32 %v1330_v37, %v1330_v37  ;;  %v1348_v4 = vsub.f32 %v1322_v24, %v1330_v37 }
0x1057   :  { %v1338_v41 = vpop.xlane.xlu0 %1337 }
0x1058   :  { %v1343_v45 = vsub.f32 %v1339_v40, %v1341_v39  ;;  %v1340_v46 = vmul.f32 0.03125, %v1338_v41 }
0x105a   :  { %v1345_v47 = vmax.f32 %v1343_v45, 0.0  ;;  %v1344_v7 = vsub.f32 %v1340_v46, %v1342_v44 }
0x105c   :  { %v1349_v8 = vadd.f32 1e-12, %v1345_v47  ;;  %v1346_v13 = vmax.f32 %v1344_v7, 0.0 }
0x105e   :  { %1797 = vrsqrt.f32 %v1349_v8  ;;  %v1350_v49 = vadd.f32 1e-12, %v1346_v13 }
0x1060   :  { %1799 = vrsqrt.f32 %v1350_v49 }
0x1068   :  { %v1798_v3 = vpop.eup %1797 }
0x1069   :  { %v1353_v52 = vmul.f32 %v1798_v3, %v1347_v1 }
0x106a   :  { %v1800_v53 = vpop.eup %1799 }
0x106b   :  { %v1354_v54 = vmul.f32 %v1800_v53, %v1348_v4  ;;  %v1359_v55 = vmul.f32 %v1358_v51, %v1353_v52 }
0x106d   :  { %v1360_v57 = vmul.f32 %v1358_v51, %v1354_v54  ;;  %v1365_v58 = vadd.f32 %v1364_v56, %v1359_v55 }
0x106f   :  { %v1366_v59 = vadd.f32 %v1364_v56, %v1360_v57 }
0x1071   :  { %v1367_v60 = vpack.c.bf16 %v1366_v59, %v1365_v58 }
0x1073   :  { %1699 = vmatmul.mubr.msk.bf16.vlgmr.msra.gmra.mrb[28].mxu1 %vm100_vm1, %v1367_v60 }
0x1146   :  { %v1428_v61 = vpop.f32.mrb[28].mxu1 }
0x1147   :  { %v1429_v62 = vadd.f32 %v1523_v30, %v1428_v61  ;;  %v1700_v63 = vpop.f32.mrb[29].mxu1 }
0x1148   :  { %v1431_v0 = vpop.f32.mrb[30].mxu1 }
0x1149   :  { %1435 = vst [vmem:[#allocation2] sm:$0xff] %v1429_v62  ;;  %v1432_v20 = vadd.f32 %v1523_v30, %v1431_v0  ;;  %v1701_v2 = vpop.f32.mrb[31].mxu1 }
0x114b   :  { %1436 = vst [vmem:[#allocation2 + $0x8] sm:$0xff] %v1432_v20 }
0x114c   :  { %1812 = shalt.err (!%p1809_p4)
}
0x114d   :  { %s1813_s1 = scalar_lea.hbm %s2236_s13, 256 }
0x114e   :  { %p1814_p5 = scmp.ne.s32.totalorder %s2236_s13, %s1813_s1  ;;  %p1817_p6 = scmp.lt.u32.totalorder %s1813_s1, %s2236_s13 }
0x1150   :  { %p1819_p7 = pnand %p1817_p6, %p1814_p5 }
0x1152   :  { %1822 = shalt.err (!%p1819_p7)
}
0x1153   :  { %s1834_s7 = smov 128   ;;  %s1835_s28 = smov 8  }
0x1154   :  { %1448 = dma.vmem_to_hbm [thread:$0]  %s1443_s18, 256, %s2236_s13, [#allocation3], %s1834_s7, %s1834_s7, %s1835_s28  }
0x1155   :  { %1823 = dma.done.wait [#allocation3], 256  }
0x1156   :  { %1824 = vsyncadd [#allocation3], 4294967040 }
0x1157   :  { %1452 = vsyncpa [#allocation3], 1 }

</bundles_post_ra>
